<compile_context>
chip_gen: v6e
topology: v6e:2x2x1
jax: 0.10.0
libtpu: 0.0.40
codegen_flags: <defaults>
</compile_context>

<pallas_src>
import jax
import jax.numpy as jnp
from jax.experimental import pallas as pl
from jax.experimental.pallas import tpu as pltpu  # noqa: F401  (TPU backend)

B = 2          # batch
S = 8          # sequence length
H = 32         # config.hidden_size   (substitute-BERT feature width)
HD = 32        # config.hidden_dim    (LSTM hidden size per direction)
NL = 2         # config.n_layers
VOCAB = 100
VP = 128       # vocab padded to one full lane width
G = 4 * HD     # per-direction packed gate width  (PyTorch order [i, f, g, o])
G2 = 2 * G     # fused both-direction gate width = 256

# row offsets inside the packed bf16 weight blob
_OFF_W0 = 0                    # (2*VP, G2)  folded embedding @ wih, fwd rows then bwd rows
_OFF_WHH0 = _OFF_W0 + 2 * VP   # (2*HD, G2)  block-diag recurrence, layer 0
_OFF_WIH1 = _OFF_WHH0 + 2 * HD  # (4*HD, G2) fused input projection, layer 1
_OFF_WHH1 = _OFF_WIH1 + 4 * HD  # (2*HD, G2) block-diag recurrence, layer 1
_WROWS = _OFF_WHH1 + 2 * HD     # = 512


# ----------------------------------------------------------------------------
# Kernel
# ----------------------------------------------------------------------------
def _bilstm_kernel(ids_ref, wblob_ref, fblob_ref, out_ref):
    f32 = jnp.float32
    bf16 = jnp.bfloat16

    # ---- weights: static, tile-aligned slices of the two packed blobs -------
    w0 = wblob_ref[_OFF_W0:_OFF_W0 + 2 * VP, :]            # (256, 256) bf16
    whh0 = wblob_ref[_OFF_WHH0:_OFF_WHH0 + 2 * HD, :]      # (64, 256)  bf16
    wih1 = wblob_ref[_OFF_WIH1:_OFF_WIH1 + 4 * HD, :]      # (128, 256) bf16
    whh1 = wblob_ref[_OFF_WHH1:_OFF_WHH1 + 2 * HD, :]      # (64, 256)  bf16
    bias0 = fblob_ref[0:1, :]                              # (1, 256) f32
    bias1 = fblob_ref[1:2, :]                              # (1, 256) f32
    fcb = fblob_ref[2:3, :]                                # (1, 256) f32 (cols 0:2 used)
    fcw = fblob_ref[8:8 + 2 * HD, :]                       # (64, 256) f32 (cols 0:2 used)

    # sigmoid(x) = 0.5*tanh(0.5*x)+0.5 : one EUP tanh covers the i/f/o (sigmoid)
    # lanes of BOTH directions and the g (tanh) lanes by pre-scaling the
    # sigmoid region by 0.5.  Packed gate layout: [i_f,i_b,f_f,f_b,o_f,o_b,g_f,g_b].
    lane = jax.lax.broadcasted_iota(jnp.int32, (1, G2), 1)
    gate_scale = jnp.where(lane < 6 * HD, 0.5, 1.0)

    def cell(gx, h, c, whh):
        # one fused fwd+bwd LSTM step: one (B,2*HD)x(2*HD,2*G) bf16 MXU pass
        rec = jnp.dot(h.astype(bf16), whh, preferred_element_type=f32)   # (B, 256)
        t = jnp.tanh((gx + rec) * gate_scale)                            # 1 EUP pass
        sg = 0.5 * t[:, :6 * HD] + 0.5                  # sigmoid(i|f|o), both dirs
        i = sg[:, 0:2 * HD]
        f = sg[:, 2 * HD:4 * HD]
        o = sg[:, 4 * HD:6 * HD]
        g = t[:, 6 * HD:]                               # tanh(g), both dirs
        c = f * c + i * g
        h = o * jnp.tanh(c)
        return h, c

    # ---- substitute-BERT features: paired one-hot (time t | time S-1-t) -----
    # ids col 0 = token id at time t (< VP), col 1 = token id at time S-1-t
    # shifted by +VP, so one compare+or builds both one-hots in one 256-lane row.
    idp = ids_ref[...]                                                   # (S*B, 2) int32
    iota = jax.lax.broadcasted_iota(jnp.int32, (S * B, 2 * VP), 1)
    onehot = ((idp[:, 0:1] == iota) | (idp[:, 1:2] == iota)).astype(bf16)

    # ---- layer 0: embedding lookup + both input projections in ONE matmul --
    gx0 = jnp.dot(onehot, w0, preferred_element_type=f32) + bias0        # (S*B, 256)
    h = jnp.zeros((B, 2 * HD), f32)
    c = jnp.zeros((B, 2 * HD), f32)
    hs = []
    for k in range(S):                         # 8 fused dual-direction steps (unrolled)
        h, c = cell(gx0[k * B:(k + 1) * B, :], h, c, whh0)
        hs.append(h)                           # hs[k] = [h_f0(k) | h_b0(S-1-k)]

    # ---- layer-1 input, kept in registers (no scratch / masked stores) ------
    # row-block k = [h_f0(k) | h_b0(S-1-k) | h_f0(S-1-k) | h_b0(k)];
    # wih1 rows were pre-permuted host-side to match exactly this layout.
    x1 = jnp.concatenate(
        [jnp.concatenate([hs[k], hs[S - 1 - k]], axis=-1) for k in range(S)],
        axis=0)                                                          # (S*B, 4*HD)

    # ---- layer 1: fused dual-direction recurrence ---------------------------
    gx1 = jnp.dot(x1.astype(bf16), wih1, preferred_element_type=f32) + bias1
    h = jnp.zeros((B, 2 * HD), f32)
    c = jnp.zeros((B, 2 * HD), f32)
    for k in range(S):
        h, c = cell(gx1[k * B:(k + 1) * B, :], h, c, whh1)

    # final fused state h == cat([h_n[-2], h_n[-1]], dim=-1)
    out = jnp.dot(h, fcw, preferred_element_type=f32) + fcb              # (B, 256)
    out_ref[...] = out[:, :2]


# ----------------------------------------------------------------------------
# Wrapper
# ----------------------------------------------------------------------------
def bilstm_forward(packed_params, modelcard_ids, modelcard_mask):
    # TODO(synk): attention_mask is unused — matches the plain (unpacked)
    # nn.LSTM of the reference; the BERT encoder is a substitute embedding.
    del modelcard_mask
    wblob, fblob = packed_params
    ids = modelcard_ids.astype(jnp.int32).T                 # (S, B), seq-first
    ids_pair = jnp.stack(
        [ids.reshape(S * B), ids[::-1].reshape(S * B) + VP], axis=-1)    # (S*B, 2)
    return pl.pallas_call(
        _bilstm_kernel,
        out_shape=jax.ShapeDtypeStruct((B, 2), jnp.float32),
    )(ids_pair, wblob, fblob)


# ----------------------------------------------------------------------------
# Parameters (natural / PyTorch-equivalent layout) and host-side packing
# ----------------------------------------------------------------------------
def init_params(key):
    # Weights stored pre-transposed w.r.t. PyTorch nn.LSTM / nn.Linear:
    #   wih_{f,b} = weight_ih_l{k}(_reverse).T : (in_size, 4*HD)
    #   whh_{f,b} = weight_hh_l{k}(_reverse).T : (HD, 4*HD)
    #   b_{f,b}   = (bias_ih + bias_hh).reshape(1, 4*HD)
    #   fc0_w     = fc0.weight.T               : (2*HD, 2)
    # Gate order along the 4*HD axis follows PyTorch: [i, f, g, o].
    ks = jax.random.split(key, 2 + NL * 4)

    def normal(k, shape, std=0.02):
        return std * jax.random.normal(k, shape, dtype=jnp.float32)

    layers = []
    kidx = 2
    for li in range(NL):
        in_size = H if li == 0 else 2 * HD
        layer = {}
        for tag in ("f", "b"):
            layer[f"wih_{tag}"] = normal(ks[kidx], (in_size, G)); kidx += 1
            layer[f"whh_{tag}"] = normal(ks[kidx], (HD, G)); kidx += 1
            layer[f"b_{tag}"] = jnp.zeros((1, G), jnp.float32)
        layers.append(layer)

    return {
        "embedding": normal(ks[0], (VOCAB, H), 1.0),
        "fc0_w": normal(ks[1], (2 * HD, 2)),
        "fc0_b": jnp.zeros((1, 2), jnp.float32),
        "lstm": layers,
    }


def _split_gates(w):
    """Split a (rows, 4*HD) PyTorch-ordered [i, f, g, o] weight into gates."""
    return (w[:, 0 * HD:1 * HD], w[:, 1 * HD:2 * HD],
            w[:, 2 * HD:3 * HD], w[:, 3 * HD:4 * HD])


def _scatter_gates(w, direction):
    """Place a (rows, 4*HD) per-direction weight into the fused (rows, 2*G)
    column layout [i_f, i_b, f_f, f_b, o_f, o_b, g_f, g_b]."""
    i, f, g, o = _split_gates(w)
    z = jnp.zeros_like(i)
    if direction == "f":
        parts = (i, z, f, z, o, z, g, z)
    else:
        parts = (z, i, z, f, z, o, z, g)
    return jnp.concatenate(parts, axis=-1)


def pack_params(params):
    """Pack natural params into (bf16 weight blob, f32 bias/fc blob)."""
    hi = jax.lax.Precision.HIGHEST
    l0, l1 = params["lstm"]

    # layer 0: pad vocab to VP and fold the embedding into both directions'
    # input projections (one-hot @ W0 == embedding lookup + wih projection).
    emb_pad = jnp.zeros((VP, H), jnp.float32).at[:VOCAB].set(params["embedding"])
    w0a = jnp.dot(emb_pad, _scatter_gates(l0["wih_f"], "f"), precision=hi)   # (VP, 256)
    w0b = jnp.dot(emb_pad, _scatter_gates(l0["wih_b"], "b"), precision=hi)   # (VP, 256)
    whh0_bd = jnp.concatenate([_scatter_gates(l0["whh_f"], "f"),
                               _scatter_gates(l0["whh_b"], "b")], axis=0)    # (64, 256)

    # layer 1: the in-kernel x1 row layout is
    #   [h_f0(t), h_b0(S-1-t), h_f0(S-1-t), h_b0(t)]  (HD each)
    # so the fused wih1 rows are permuted accordingly.
    wih1_f, wih1_b = l1["wih_f"], l1["wih_b"]                                # (2*HD, 4*HD)
    wih1_bd = jnp.concatenate([_scatter_gates(wih1_f[:HD], "f"),
                               _scatter_gates(wih1_b[HD:], "b"),
                               _scatter_gates(wih1_b[:HD], "b"),
                               _scatter_gates(wih1_f[HD:], "f")], axis=0)    # (128, 256)
    whh1_bd = jnp.concatenate([_scatter_gates(l1["whh_f"], "f"),
                               _scatter_gates(l1["whh_b"], "b")], axis=0)    # (64, 256)

    wblob = jnp.concatenate([w0a, w0b, whh0_bd, wih1_bd, whh1_bd],
                            axis=0).astype(jnp.bfloat16)                     # (512, 256)
    assert wblob.shape == (_WROWS, G2), wblob.shape

    bias0 = _scatter_gates(l0["b_f"], "f") + _scatter_gates(l0["b_b"], "b")  # (1, 256)
    bias1 = _scatter_gates(l1["b_f"], "f") + _scatter_gates(l1["b_b"], "b")  # (1, 256)
    fcb_pad = jnp.zeros((1, G2), jnp.float32).at[:, :2].set(params["fc0_b"])
    fcw_pad = jnp.zeros((2 * HD, G2), jnp.float32).at[:, :2].set(params["fc0_w"])
    fblob = jnp.concatenate(
        [bias0, bias1, fcb_pad, jnp.zeros((5, G2), jnp.float32), fcw_pad], axis=0)
    assert fblob.shape == (8 + 2 * HD, G2), fblob.shape
    return wblob, fblob


# ----------------------------------------------------------------------------
# Pure-JAX f32 reference (for validating the bf16-MXU kernel)
# ----------------------------------------------------------------------------
def _ref_forward(params, modelcard_ids):
    hi = jax.lax.Precision.HIGHEST
    x = params["embedding"][modelcard_ids]              # (B, S, H)
    x = jnp.transpose(x, (1, 0, 2))                     # (S, B, H) seq-first

    def run_dir(xs, wih, whh, b, reverse):
        order = range(S - 1, -1, -1) if reverse else range(S)
        h = jnp.zeros((B, HD), jnp.float32)
        c = jnp.zeros((B, HD), jnp.float32)
        outs = [None] * S
        for t in order:
            gates = (jnp.dot(xs[t], wih, precision=hi)
                     + jnp.dot(h, whh, precision=hi) + b)          # (B, 4*HD) [i,f,g,o]
            i = jax.nn.sigmoid(gates[:, 0 * HD:1 * HD])
            f = jax.nn.sigmoid(gates[:, 1 * HD:2 * HD])
            g = jnp.tanh(gates[:, 2 * HD:3 * HD])
            o = jax.nn.sigmoid(gates[:, 3 * HD:4 * HD])
            c = f * c + i * g
            h = o * jnp.tanh(c)
            outs[t] = h
        return jnp.stack(outs, 0), h

    l0, l1 = params["lstm"]
    of, _ = run_dir(x, l0["wih_f"], l0["whh_f"], l0["b_f"], False)
    ob, _ = run_dir(x, l0["wih_b"], l0["whh_b"], l0["b_b"], True)
    x1 = jnp.concatenate([of, ob], axis=-1)              # (S, B, 2*HD)
    _, hf = run_dir(x1, l1["wih_f"], l1["whh_f"], l1["b_f"], False)   # h_n[-2]
    _, hb = run_dir(x1, l1["wih_b"], l1["whh_b"], l1["b_b"], True)    # h_n[-1]
    feats = jnp.concatenate([hf, hb], axis=-1)
    return jnp.dot(feats, params["fc0_w"], precision=hi) + params["fc0_b"]


# ----------------------------------------------------------------------------
if __name__ == "__main__":
    key = jax.random.PRNGKey(0)
    pkey, ikey = jax.random.split(key)
    params = init_params(pkey)
    packed = pack_params(params)

    modelcard_ids = jax.random.randint(ikey, (B, S), 0, VOCAB, dtype=jnp.int32)
    modelcard_mask = jnp.ones((B, S), dtype=jnp.int32)

    logits = jax.jit(bilstm_forward)(packed, modelcard_ids, modelcard_mask)
    logits = jax.block_until_ready(logits)

    assert logits.shape == (B, 2), logits.shape
    assert bool(jnp.all(jnp.isfinite(logits)))

    # validate the bf16-MXU kernel against the f32 pure-JAX reference
    ref = jax.jit(_ref_forward)(params, modelcard_ids)
    ref = jax.block_until_ready(ref)
    assert jnp.allclose(logits, ref, atol=2e-4, rtol=5e-2), (logits, ref)

    print("KERNEL_OK")
</pallas_src>

<mosaic_0001>
module attributes {stable_mosaic.version = 11 : i64} {
  func.func @_bilstm_kernel(%arg0: memref<16x2xi32, #tpu.memory_space<vmem>>, %arg1: memref<512x256xbf16, #tpu.memory_space<vmem>>, %arg2: memref<72x256xf32, #tpu.memory_space<vmem>>, %arg3: memref<2x2xf32, #tpu.memory_space<vmem>>) attributes {dimension_semantics = [], scalar_prefetch = 0 : i64, scratch_operands = 0 : i64, tpu.core_type = #tpu.core_type<tc>} {
    %c0 = arith.constant 0 : index
    %c0_0 = arith.constant 0 : index
    %0 = vector.load %arg1[%c0, %c0_0] : memref<512x256xbf16, #tpu.memory_space<vmem>>, vector<256x256xbf16>
    %c256 = arith.constant 256 : index
    %c0_1 = arith.constant 0 : index
    %1 = vector.load %arg1[%c256, %c0_1] : memref<512x256xbf16, #tpu.memory_space<vmem>>, vector<64x256xbf16>
    %c320 = arith.constant 320 : index
    %c0_2 = arith.constant 0 : index
    %2 = vector.load %arg1[%c320, %c0_2] : memref<512x256xbf16, #tpu.memory_space<vmem>>, vector<128x256xbf16>
    %c448 = arith.constant 448 : index
    %c0_3 = arith.constant 0 : index
    %3 = vector.load %arg1[%c448, %c0_3] : memref<512x256xbf16, #tpu.memory_space<vmem>>, vector<64x256xbf16>
    %c0_4 = arith.constant 0 : index
    %c0_5 = arith.constant 0 : index
    %4 = vector.load %arg2[%c0_4, %c0_5] : memref<72x256xf32, #tpu.memory_space<vmem>>, vector<1x256xf32>
    %c1 = arith.constant 1 : index
    %c0_6 = arith.constant 0 : index
    %5 = vector.load %arg2[%c1, %c0_6] : memref<72x256xf32, #tpu.memory_space<vmem>>, vector<1x256xf32>
    %c2 = arith.constant 2 : index
    %c0_7 = arith.constant 0 : index
    %6 = vector.load %arg2[%c2, %c0_7] : memref<72x256xf32, #tpu.memory_space<vmem>>, vector<1x256xf32>
    %c8 = arith.constant 8 : index
    %c0_8 = arith.constant 0 : index
    %7 = vector.load %arg2[%c8, %c0_8] : memref<72x256xf32, #tpu.memory_space<vmem>>, vector<64x256xf32>
    %8 = tpu.iota {dimensions = array<i32: 1>} : vector<1x256xi32>
    %c192_i32 = arith.constant 192 : i32
    %9 = vector.broadcast %c192_i32 : i32 to vector<1x256xi32>
    %10 = arith.cmpi slt, %8, %9 : vector<1x256xi32>
    %cst = arith.constant 5.000000e-01 : f32
    %cst_9 = arith.constant 1.000000e+00 : f32
    %11 = vector.broadcast %cst : f32 to vector<1x256xf32>
    %12 = vector.broadcast %cst_9 : f32 to vector<1x256xf32>
    %13 = arith.select %10, %11, %12 : vector<1x256xi1>, vector<1x256xf32>
    %c0_10 = arith.constant 0 : index
    %c0_11 = arith.constant 0 : index
    %14 = vector.load %arg0[%c0_10, %c0_11] : memref<16x2xi32, #tpu.memory_space<vmem>>, vector<16x2xi32>
    %15 = tpu.iota {dimensions = array<i32: 1>} : vector<16x256xi32>
    %16 = vector.extract_strided_slice %14 {offsets = [0, 0], sizes = [16, 1], strides = [1, 1]} : vector<16x2xi32> to vector<16x1xi32>
    %17 = vector.broadcast %16 : vector<16x1xi32> to vector<16x256xi32>
    %18 = arith.cmpi eq, %17, %15 : vector<16x256xi32>
    %19 = vector.extract_strided_slice %14 {offsets = [0, 1], sizes = [16, 1], strides = [1, 1]} : vector<16x2xi32> to vector<16x1xi32>
    %20 = vector.broadcast %19 : vector<16x1xi32> to vector<16x256xi32>
    %21 = arith.cmpi eq, %20, %15 : vector<16x256xi32>
    %22 = arith.ori %18, %21 : vector<16x256xi1>
    %23 = arith.extui %22 : vector<16x256xi1> to vector<16x256xi32>
    %24 = arith.sitofp %23 : vector<16x256xi32> to vector<16x256xf32>
    %25 = arith.truncf %24 : vector<16x256xf32> to vector<16x256xbf16>
    %cst_12 = arith.constant dense<0.000000e+00> : vector<16x256xf32>
    %26 = tpu.matmul %25, %0, %cst_12 {dimension_numbers = #tpu.dot_dimension_numbers<[1], [0], [0], [1], [0, 0, 1, 1], [], []>} : vector<16x256xbf16>, vector<256x256xbf16>, vector<16x256xf32> -> vector<16x256xf32>
    %27 = vector.broadcast %4 : vector<1x256xf32> to vector<16x256xf32>
    %28 = arith.addf %26, %27 : vector<16x256xf32>
    %cst_13 = arith.constant 0.000000e+00 : f32
    %29 = vector.broadcast %cst_13 : f32 to vector<2x64xf32>
    %cst_14 = arith.constant 0.000000e+00 : f32
    %30 = vector.broadcast %cst_14 : f32 to vector<2x64xf32>
    %31 = vector.extract_strided_slice %28 {offsets = [0, 0], sizes = [2, 256], strides = [1, 1]} : vector<16x256xf32> to vector<2x256xf32>
    %32 = arith.truncf %29 : vector<2x64xf32> to vector<2x64xbf16>
    %cst_15 = arith.constant dense<0.000000e+00> : vector<2x256xf32>
    %33 = tpu.matmul %32, %1, %cst_15 {dimension_numbers = #tpu.dot_dimension_numbers<[1], [0], [0], [1], [0, 0, 1, 1], [], []>} : vector<2x64xbf16>, vector<64x256xbf16>, vector<2x256xf32> -> vector<2x256xf32>
    %34 = arith.addf %31, %33 : vector<2x256xf32>
    %35 = vector.broadcast %13 : vector<1x256xf32> to vector<2x256xf32>
    %36 = arith.mulf %34, %35 : vector<2x256xf32>
    %37 = math.tanh %36 : vector<2x256xf32>
    %38 = vector.extract_strided_slice %37 {offsets = [0, 0], sizes = [2, 192], strides = [1, 1]} : vector<2x256xf32> to vector<2x192xf32>
    %cst_16 = arith.constant 5.000000e-01 : f32
    %39 = vector.broadcast %cst_16 : f32 to vector<2x192xf32>
    %40 = arith.mulf %39, %38 : vector<2x192xf32>
    %cst_17 = arith.constant 5.000000e-01 : f32
    %41 = vector.broadcast %cst_17 : f32 to vector<2x192xf32>
    %42 = arith.addf %40, %41 : vector<2x192xf32>
    %43 = vector.extract_strided_slice %42 {offsets = [0, 0], sizes = [2, 64], strides = [1, 1]} : vector<2x192xf32> to vector<2x64xf32>
    %44 = vector.extract_strided_slice %42 {offsets = [0, 64], sizes = [2, 64], strides = [1, 1]} : vector<2x192xf32> to vector<2x64xf32>
    %45 = vector.extract_strided_slice %42 {offsets = [0, 128], sizes = [2, 64], strides = [1, 1]} : vector<2x192xf32> to vector<2x64xf32>
    %46 = vector.extract_strided_slice %37 {offsets = [0, 192], sizes = [2, 64], strides = [1, 1]} : vector<2x256xf32> to vector<2x64xf32>
    %47 = arith.mulf %44, %30 : vector<2x64xf32>
    %48 = arith.mulf %43, %46 : vector<2x64xf32>
    %49 = arith.addf %47, %48 : vector<2x64xf32>
    %50 = math.tanh %49 : vector<2x64xf32>
    %51 = arith.mulf %45, %50 : vector<2x64xf32>
    %52 = vector.extract_strided_slice %28 {offsets = [2, 0], sizes = [2, 256], strides = [1, 1]} : vector<16x256xf32> to vector<2x256xf32>
    %53 = arith.truncf %51 : vector<2x64xf32> to vector<2x64xbf16>
    %cst_18 = arith.constant dense<0.000000e+00> : vector<2x256xf32>
    %54 = tpu.matmul %53, %1, %cst_18 {dimension_numbers = #tpu.dot_dimension_numbers<[1], [0], [0], [1], [0, 0, 1, 1], [], []>} : vector<2x64xbf16>, vector<64x256xbf16>, vector<2x256xf32> -> vector<2x256xf32>
    %55 = arith.addf %52, %54 : vector<2x256xf32>
    %56 = vector.broadcast %13 : vector<1x256xf32> to vector<2x256xf32>
    %57 = arith.mulf %55, %56 : vector<2x256xf32>
    %58 = math.tanh %57 : vector<2x256xf32>
    %59 = vector.extract_strided_slice %58 {offsets = [0, 0], sizes = [2, 192], strides = [1, 1]} : vector<2x256xf32> to vector<2x192xf32>
    %cst_19 = arith.constant 5.000000e-01 : f32
    %60 = vector.broadcast %cst_19 : f32 to vector<2x192xf32>
    %61 = arith.mulf %60, %59 : vector<2x192xf32>
    %cst_20 = arith.constant 5.000000e-01 : f32
    %62 = vector.broadcast %cst_20 : f32 to vector<2x192xf32>
    %63 = arith.addf %61, %62 : vector<2x192xf32>
    %64 = vector.extract_strided_slice %63 {offsets = [0, 0], sizes = [2, 64], strides = [1, 1]} : vector<2x192xf32> to vector<2x64xf32>
    %65 = vector.extract_strided_slice %63 {offsets = [0, 64], sizes = [2, 64], strides = [1, 1]} : vector<2x192xf32> to vector<2x64xf32>
    %66 = vector.extract_strided_slice %63 {offsets = [0, 128], sizes = [2, 64], strides = [1, 1]} : vector<2x192xf32> to vector<2x64xf32>
    %67 = vector.extract_strided_slice %58 {offsets = [0, 192], sizes = [2, 64], strides = [1, 1]} : vector<2x256xf32> to vector<2x64xf32>
    %68 = arith.mulf %65, %49 : vector<2x64xf32>
    %69 = arith.mulf %64, %67 : vector<2x64xf32>
    %70 = arith.addf %68, %69 : vector<2x64xf32>
    %71 = math.tanh %70 : vector<2x64xf32>
    %72 = arith.mulf %66, %71 : vector<2x64xf32>
    %73 = vector.extract_strided_slice %28 {offsets = [4, 0], sizes = [2, 256], strides = [1, 1]} : vector<16x256xf32> to vector<2x256xf32>
    %74 = arith.truncf %72 : vector<2x64xf32> to vector<2x64xbf16>
    %cst_21 = arith.constant dense<0.000000e+00> : vector<2x256xf32>
    %75 = tpu.matmul %74, %1, %cst_21 {dimension_numbers = #tpu.dot_dimension_numbers<[1], [0], [0], [1], [0, 0, 1, 1], [], []>} : vector<2x64xbf16>, vector<64x256xbf16>, vector<2x256xf32> -> vector<2x256xf32>
    %76 = arith.addf %73, %75 : vector<2x256xf32>
    %77 = vector.broadcast %13 : vector<1x256xf32> to vector<2x256xf32>
    %78 = arith.mulf %76, %77 : vector<2x256xf32>
    %79 = math.tanh %78 : vector<2x256xf32>
    %80 = vector.extract_strided_slice %79 {offsets = [0, 0], sizes = [2, 192], strides = [1, 1]} : vector<2x256xf32> to vector<2x192xf32>
    %cst_22 = arith.constant 5.000000e-01 : f32
    %81 = vector.broadcast %cst_22 : f32 to vector<2x192xf32>
    %82 = arith.mulf %81, %80 : vector<2x192xf32>
    %cst_23 = arith.constant 5.000000e-01 : f32
    %83 = vector.broadcast %cst_23 : f32 to vector<2x192xf32>
    %84 = arith.addf %82, %83 : vector<2x192xf32>
    %85 = vector.extract_strided_slice %84 {offsets = [0, 0], sizes = [2, 64], strides = [1, 1]} : vector<2x192xf32> to vector<2x64xf32>
    %86 = vector.extract_strided_slice %84 {offsets = [0, 64], sizes = [2, 64], strides = [1, 1]} : vector<2x192xf32> to vector<2x64xf32>
    %87 = vector.extract_strided_slice %84 {offsets = [0, 128], sizes = [2, 64], strides = [1, 1]} : vector<2x192xf32> to vector<2x64xf32>
    %88 = vector.extract_strided_slice %79 {offsets = [0, 192], sizes = [2, 64], strides = [1, 1]} : vector<2x256xf32> to vector<2x64xf32>
    %89 = arith.mulf %86, %70 : vector<2x64xf32>
    %90 = arith.mulf %85, %88 : vector<2x64xf32>
    %91 = arith.addf %89, %90 : vector<2x64xf32>
    %92 = math.tanh %91 : vector<2x64xf32>
    %93 = arith.mulf %87, %92 : vector<2x64xf32>
    %94 = vector.extract_strided_slice %28 {offsets = [6, 0], sizes = [2, 256], strides = [1, 1]} : vector<16x256xf32> to vector<2x256xf32>
    %95 = arith.truncf %93 : vector<2x64xf32> to vector<2x64xbf16>
    %cst_24 = arith.constant dense<0.000000e+00> : vector<2x256xf32>
    %96 = tpu.matmul %95, %1, %cst_24 {dimension_numbers = #tpu.dot_dimension_numbers<[1], [0], [0], [1], [0, 0, 1, 1], [], []>} : vector<2x64xbf16>, vector<64x256xbf16>, vector<2x256xf32> -> vector<2x256xf32>
    %97 = arith.addf %94, %96 : vector<2x256xf32>
    %98 = vector.broadcast %13 : vector<1x256xf32> to vector<2x256xf32>
    %99 = arith.mulf %97, %98 : vector<2x256xf32>
    %100 = math.tanh %99 : vector<2x256xf32>
    %101 = vector.extract_strided_slice %100 {offsets = [0, 0], sizes = [2, 192], strides = [1, 1]} : vector<2x256xf32> to vector<2x192xf32>
    %cst_25 = arith.constant 5.000000e-01 : f32
    %102 = vector.broadcast %cst_25 : f32 to vector<2x192xf32>
    %103 = arith.mulf %102, %101 : vector<2x192xf32>
    %cst_26 = arith.constant 5.000000e-01 : f32
    %104 = vector.broadcast %cst_26 : f32 to vector<2x192xf32>
    %105 = arith.addf %103, %104 : vector<2x192xf32>
    %106 = vector.extract_strided_slice %105 {offsets = [0, 0], sizes = [2, 64], strides = [1, 1]} : vector<2x192xf32> to vector<2x64xf32>
    %107 = vector.extract_strided_slice %105 {offsets = [0, 64], sizes = [2, 64], strides = [1, 1]} : vector<2x192xf32> to vector<2x64xf32>
    %108 = vector.extract_strided_slice %105 {offsets = [0, 128], sizes = [2, 64], strides = [1, 1]} : vector<2x192xf32> to vector<2x64xf32>
    %109 = vector.extract_strided_slice %100 {offsets = [0, 192], sizes = [2, 64], strides = [1, 1]} : vector<2x256xf32> to vector<2x64xf32>
    %110 = arith.mulf %107, %91 : vector<2x64xf32>
    %111 = arith.mulf %106, %109 : vector<2x64xf32>
    %112 = arith.addf %110, %111 : vector<2x64xf32>
    %113 = math.tanh %112 : vector<2x64xf32>
    %114 = arith.mulf %108, %113 : vector<2x64xf32>
    %115 = vector.extract_strided_slice %28 {offsets = [8, 0], sizes = [2, 256], strides = [1, 1]} : vector<16x256xf32> to vector<2x256xf32>
    %116 = arith.truncf %114 : vector<2x64xf32> to vector<2x64xbf16>
    %cst_27 = arith.constant dense<0.000000e+00> : vector<2x256xf32>
    %117 = tpu.matmul %116, %1, %cst_27 {dimension_numbers = #tpu.dot_dimension_numbers<[1], [0], [0], [1], [0, 0, 1, 1], [], []>} : vector<2x64xbf16>, vector<64x256xbf16>, vector<2x256xf32> -> vector<2x256xf32>
    %118 = arith.addf %115, %117 : vector<2x256xf32>
    %119 = vector.broadcast %13 : vector<1x256xf32> to vector<2x256xf32>
    %120 = arith.mulf %118, %119 : vector<2x256xf32>
    %121 = math.tanh %120 : vector<2x256xf32>
    %122 = vector.extract_strided_slice %121 {offsets = [0, 0], sizes = [2, 192], strides = [1, 1]} : vector<2x256xf32> to vector<2x192xf32>
    %cst_28 = arith.constant 5.000000e-01 : f32
    %123 = vector.broadcast %cst_28 : f32 to vector<2x192xf32>
    %124 = arith.mulf %123, %122 : vector<2x192xf32>
    %cst_29 = arith.constant 5.000000e-01 : f32
    %125 = vector.broadcast %cst_29 : f32 to vector<2x192xf32>
    %126 = arith.addf %124, %125 : vector<2x192xf32>
    %127 = vector.extract_strided_slice %126 {offsets = [0, 0], sizes = [2, 64], strides = [1, 1]} : vector<2x192xf32> to vector<2x64xf32>
    %128 = vector.extract_strided_slice %126 {offsets = [0, 64], sizes = [2, 64], strides = [1, 1]} : vector<2x192xf32> to vector<2x64xf32>
    %129 = vector.extract_strided_slice %126 {offsets = [0, 128], sizes = [2, 64], strides = [1, 1]} : vector<2x192xf32> to vector<2x64xf32>
    %130 = vector.extract_strided_slice %121 {offsets = [0, 192], sizes = [2, 64], strides = [1, 1]} : vector<2x256xf32> to vector<2x64xf32>
    %131 = arith.mulf %128, %112 : vector<2x64xf32>
    %132 = arith.mulf %127, %130 : vector<2x64xf32>
    %133 = arith.addf %131, %132 : vector<2x64xf32>
    %134 = math.tanh %133 : vector<2x64xf32>
    %135 = arith.mulf %129, %134 : vector<2x64xf32>
    %136 = vector.extract_strided_slice %28 {offsets = [10, 0], sizes = [2, 256], strides = [1, 1]} : vector<16x256xf32> to vector<2x256xf32>
    %137 = arith.truncf %135 : vector<2x64xf32> to vector<2x64xbf16>
    %cst_30 = arith.constant dense<0.000000e+00> : vector<2x256xf32>
    %138 = tpu.matmul %137, %1, %cst_30 {dimension_numbers = #tpu.dot_dimension_numbers<[1], [0], [0], [1], [0, 0, 1, 1], [], []>} : vector<2x64xbf16>, vector<64x256xbf16>, vector<2x256xf32> -> vector<2x256xf32>
    %139 = arith.addf %136, %138 : vector<2x256xf32>
    %140 = vector.broadcast %13 : vector<1x256xf32> to vector<2x256xf32>
    %141 = arith.mulf %139, %140 : vector<2x256xf32>
    %142 = math.tanh %141 : vector<2x256xf32>
    %143 = vector.extract_strided_slice %142 {offsets = [0, 0], sizes = [2, 192], strides = [1, 1]} : vector<2x256xf32> to vector<2x192xf32>
    %cst_31 = arith.constant 5.000000e-01 : f32
    %144 = vector.broadcast %cst_31 : f32 to vector<2x192xf32>
    %145 = arith.mulf %144, %143 : vector<2x192xf32>
    %cst_32 = arith.constant 5.000000e-01 : f32
    %146 = vector.broadcast %cst_32 : f32 to vector<2x192xf32>
    %147 = arith.addf %145, %146 : vector<2x192xf32>
    %148 = vector.extract_strided_slice %147 {offsets = [0, 0], sizes = [2, 64], strides = [1, 1]} : vector<2x192xf32> to vector<2x64xf32>
    %149 = vector.extract_strided_slice %147 {offsets = [0, 64], sizes = [2, 64], strides = [1, 1]} : vector<2x192xf32> to vector<2x64xf32>
    %150 = vector.extract_strided_slice %147 {offsets = [0, 128], sizes = [2, 64], strides = [1, 1]} : vector<2x192xf32> to vector<2x64xf32>
    %151 = vector.extract_strided_slice %142 {offsets = [0, 192], sizes = [2, 64], strides = [1, 1]} : vector<2x256xf32> to vector<2x64xf32>
    %152 = arith.mulf %149, %133 : vector<2x64xf32>
    %153 = arith.mulf %148, %151 : vector<2x64xf32>
    %154 = arith.addf %152, %153 : vector<2x64xf32>
    %155 = math.tanh %154 : vector<2x64xf32>
    %156 = arith.mulf %150, %155 : vector<2x64xf32>
    %157 = vector.extract_strided_slice %28 {offsets = [12, 0], sizes = [2, 256], strides = [1, 1]} : vector<16x256xf32> to vector<2x256xf32>
    %158 = arith.truncf %156 : vector<2x64xf32> to vector<2x64xbf16>
    %cst_33 = arith.constant dense<0.000000e+00> : vector<2x256xf32>
    %159 = tpu.matmul %158, %1, %cst_33 {dimension_numbers = #tpu.dot_dimension_numbers<[1], [0], [0], [1], [0, 0, 1, 1], [], []>} : vector<2x64xbf16>, vector<64x256xbf16>, vector<2x256xf32> -> vector<2x256xf32>
    %160 = arith.addf %157, %159 : vector<2x256xf32>
    %161 = vector.broadcast %13 : vector<1x256xf32> to vector<2x256xf32>
    %162 = arith.mulf %160, %161 : vector<2x256xf32>
    %163 = math.tanh %162 : vector<2x256xf32>
    %164 = vector.extract_strided_slice %163 {offsets = [0, 0], sizes = [2, 192], strides = [1, 1]} : vector<2x256xf32> to vector<2x192xf32>
    %cst_34 = arith.constant 5.000000e-01 : f32
    %165 = vector.broadcast %cst_34 : f32 to vector<2x192xf32>
    %166 = arith.mulf %165, %164 : vector<2x192xf32>
    %cst_35 = arith.constant 5.000000e-01 : f32
    %167 = vector.broadcast %cst_35 : f32 to vector<2x192xf32>
    %168 = arith.addf %166, %167 : vector<2x192xf32>
    %169 = vector.extract_strided_slice %168 {offsets = [0, 0], sizes = [2, 64], strides = [1, 1]} : vector<2x192xf32> to vector<2x64xf32>
    %170 = vector.extract_strided_slice %168 {offsets = [0, 64], sizes = [2, 64], strides = [1, 1]} : vector<2x192xf32> to vector<2x64xf32>
    %171 = vector.extract_strided_slice %168 {offsets = [0, 128], sizes = [2, 64], strides = [1, 1]} : vector<2x192xf32> to vector<2x64xf32>
    %172 = vector.extract_strided_slice %163 {offsets = [0, 192], sizes = [2, 64], strides = [1, 1]} : vector<2x256xf32> to vector<2x64xf32>
    %173 = arith.mulf %170, %154 : vector<2x64xf32>
    %174 = arith.mulf %169, %172 : vector<2x64xf32>
    %175 = arith.addf %173, %174 : vector<2x64xf32>
    %176 = math.tanh %175 : vector<2x64xf32>
    %177 = arith.mulf %171, %176 : vector<2x64xf32>
    %178 = vector.extract_strided_slice %28 {offsets = [14, 0], sizes = [2, 256], strides = [1, 1]} : vector<16x256xf32> to vector<2x256xf32>
    %179 = arith.truncf %177 : vector<2x64xf32> to vector<2x64xbf16>
    %cst_36 = arith.constant dense<0.000000e+00> : vector<2x256xf32>
    %180 = tpu.matmul %179, %1, %cst_36 {dimension_numbers = #tpu.dot_dimension_numbers<[1], [0], [0], [1], [0, 0, 1, 1], [], []>} : vector<2x64xbf16>, vector<64x256xbf16>, vector<2x256xf32> -> vector<2x256xf32>
    %181 = arith.addf %178, %180 : vector<2x256xf32>
    %182 = vector.broadcast %13 : vector<1x256xf32> to vector<2x256xf32>
    %183 = arith.mulf %181, %182 : vector<2x256xf32>
    %184 = math.tanh %183 : vector<2x256xf32>
    %185 = vector.extract_strided_slice %184 {offsets = [0, 0], sizes = [2, 192], strides = [1, 1]} : vector<2x256xf32> to vector<2x192xf32>
    %cst_37 = arith.constant 5.000000e-01 : f32
    %186 = vector.broadcast %cst_37 : f32 to vector<2x192xf32>
    %187 = arith.mulf %186, %185 : vector<2x192xf32>
    %cst_38 = arith.constant 5.000000e-01 : f32
    %188 = vector.broadcast %cst_38 : f32 to vector<2x192xf32>
    %189 = arith.addf %187, %188 : vector<2x192xf32>
    %190 = vector.extract_strided_slice %189 {offsets = [0, 0], sizes = [2, 64], strides = [1, 1]} : vector<2x192xf32> to vector<2x64xf32>
    %191 = vector.extract_strided_slice %189 {offsets = [0, 64], sizes = [2, 64], strides = [1, 1]} : vector<2x192xf32> to vector<2x64xf32>
    %192 = vector.extract_strided_slice %189 {offsets = [0, 128], sizes = [2, 64], strides = [1, 1]} : vector<2x192xf32> to vector<2x64xf32>
    %193 = vector.extract_strided_slice %184 {offsets = [0, 192], sizes = [2, 64], strides = [1, 1]} : vector<2x256xf32> to vector<2x64xf32>
    %194 = arith.mulf %191, %175 : vector<2x64xf32>
    %195 = arith.mulf %190, %193 : vector<2x64xf32>
    %196 = arith.addf %194, %195 : vector<2x64xf32>
    %197 = math.tanh %196 : vector<2x64xf32>
    %198 = arith.mulf %192, %197 : vector<2x64xf32>
    %199 = tpu.concatenate %51, %198 in 1 : vector<2x64xf32>, vector<2x64xf32> -> vector<2x128xf32>
    %200 = tpu.concatenate %72, %177 in 1 : vector<2x64xf32>, vector<2x64xf32> -> vector<2x128xf32>
    %201 = tpu.concatenate %93, %156 in 1 : vector<2x64xf32>, vector<2x64xf32> -> vector<2x128xf32>
    %202 = tpu.concatenate %114, %135 in 1 : vector<2x64xf32>, vector<2x64xf32> -> vector<2x128xf32>
    %203 = tpu.concatenate %135, %114 in 1 : vector<2x64xf32>, vector<2x64xf32> -> vector<2x128xf32>
    %204 = tpu.concatenate %156, %93 in 1 : vector<2x64xf32>, vector<2x64xf32> -> vector<2x128xf32>
    %205 = tpu.concatenate %177, %72 in 1 : vector<2x64xf32>, vector<2x64xf32> -> vector<2x128xf32>
    %206 = tpu.concatenate %198, %51 in 1 : vector<2x64xf32>, vector<2x64xf32> -> vector<2x128xf32>
    %207 = tpu.concatenate %199, %200, %201, %202, %203, %204, %205, %206 in 0 : vector<2x128xf32>, vector<2x128xf32>, vector<2x128xf32>, vector<2x128xf32>, vector<2x128xf32>, vector<2x128xf32>, vector<2x128xf32>, vector<2x128xf32> -> vector<16x128xf32>
    %208 = arith.truncf %207 : vector<16x128xf32> to vector<16x128xbf16>
    %cst_39 = arith.constant dense<0.000000e+00> : vector<16x256xf32>
    %209 = tpu.matmul %208, %2, %cst_39 {dimension_numbers = #tpu.dot_dimension_numbers<[1], [0], [0], [1], [0, 0, 1, 1], [], []>} : vector<16x128xbf16>, vector<128x256xbf16>, vector<16x256xf32> -> vector<16x256xf32>
    %210 = vector.broadcast %5 : vector<1x256xf32> to vector<16x256xf32>
    %211 = arith.addf %209, %210 : vector<16x256xf32>
    %cst_40 = arith.constant 0.000000e+00 : f32
    %212 = vector.broadcast %cst_40 : f32 to vector<2x64xf32>
    %cst_41 = arith.constant 0.000000e+00 : f32
    %213 = vector.broadcast %cst_41 : f32 to vector<2x64xf32>
    %214 = vector.extract_strided_slice %211 {offsets = [0, 0], sizes = [2, 256], strides = [1, 1]} : vector<16x256xf32> to vector<2x256xf32>
    %215 = arith.truncf %212 : vector<2x64xf32> to vector<2x64xbf16>
    %cst_42 = arith.constant dense<0.000000e+00> : vector<2x256xf32>
    %216 = tpu.matmul %215, %3, %cst_42 {dimension_numbers = #tpu.dot_dimension_numbers<[1], [0], [0], [1], [0, 0, 1, 1], [], []>} : vector<2x64xbf16>, vector<64x256xbf16>, vector<2x256xf32> -> vector<2x256xf32>
    %217 = arith.addf %214, %216 : vector<2x256xf32>
    %218 = vector.broadcast %13 : vector<1x256xf32> to vector<2x256xf32>
    %219 = arith.mulf %217, %218 : vector<2x256xf32>
    %220 = math.tanh %219 : vector<2x256xf32>
    %221 = vector.extract_strided_slice %220 {offsets = [0, 0], sizes = [2, 192], strides = [1, 1]} : vector<2x256xf32> to vector<2x192xf32>
    %cst_43 = arith.constant 5.000000e-01 : f32
    %222 = vector.broadcast %cst_43 : f32 to vector<2x192xf32>
    %223 = arith.mulf %222, %221 : vector<2x192xf32>
    %cst_44 = arith.constant 5.000000e-01 : f32
    %224 = vector.broadcast %cst_44 : f32 to vector<2x192xf32>
    %225 = arith.addf %223, %224 : vector<2x192xf32>
    %226 = vector.extract_strided_slice %225 {offsets = [0, 0], sizes = [2, 64], strides = [1, 1]} : vector<2x192xf32> to vector<2x64xf32>
    %227 = vector.extract_strided_slice %225 {offsets = [0, 64], sizes = [2, 64], strides = [1, 1]} : vector<2x192xf32> to vector<2x64xf32>
    %228 = vector.extract_strided_slice %225 {offsets = [0, 128], sizes = [2, 64], strides = [1, 1]} : vector<2x192xf32> to vector<2x64xf32>
    %229 = vector.extract_strided_slice %220 {offsets = [0, 192], sizes = [2, 64], strides = [1, 1]} : vector<2x256xf32> to vector<2x64xf32>
    %230 = arith.mulf %227, %213 : vector<2x64xf32>
    %231 = arith.mulf %226, %229 : vector<2x64xf32>
    %232 = arith.addf %230, %231 : vector<2x64xf32>
    %233 = math.tanh %232 : vector<2x64xf32>
    %234 = arith.mulf %228, %233 : vector<2x64xf32>
    %235 = vector.extract_strided_slice %211 {offsets = [2, 0], sizes = [2, 256], strides = [1, 1]} : vector<16x256xf32> to vector<2x256xf32>
    %236 = arith.truncf %234 : vector<2x64xf32> to vector<2x64xbf16>
    %cst_45 = arith.constant dense<0.000000e+00> : vector<2x256xf32>
    %237 = tpu.matmul %236, %3, %cst_45 {dimension_numbers = #tpu.dot_dimension_numbers<[1], [0], [0], [1], [0, 0, 1, 1], [], []>} : vector<2x64xbf16>, vector<64x256xbf16>, vector<2x256xf32> -> vector<2x256xf32>
    %238 = arith.addf %235, %237 : vector<2x256xf32>
    %239 = vector.broadcast %13 : vector<1x256xf32> to vector<2x256xf32>
    %240 = arith.mulf %238, %239 : vector<2x256xf32>
    %241 = math.tanh %240 : vector<2x256xf32>
    %242 = vector.extract_strided_slice %241 {offsets = [0, 0], sizes = [2, 192], strides = [1, 1]} : vector<2x256xf32> to vector<2x192xf32>
    %cst_46 = arith.constant 5.000000e-01 : f32
    %243 = vector.broadcast %cst_46 : f32 to vector<2x192xf32>
    %244 = arith.mulf %243, %242 : vector<2x192xf32>
    %cst_47 = arith.constant 5.000000e-01 : f32
    %245 = vector.broadcast %cst_47 : f32 to vector<2x192xf32>
    %246 = arith.addf %244, %245 : vector<2x192xf32>
    %247 = vector.extract_strided_slice %246 {offsets = [0, 0], sizes = [2, 64], strides = [1, 1]} : vector<2x192xf32> to vector<2x64xf32>
    %248 = vector.extract_strided_slice %246 {offsets = [0, 64], sizes = [2, 64], strides = [1, 1]} : vector<2x192xf32> to vector<2x64xf32>
    %249 = vector.extract_strided_slice %246 {offsets = [0, 128], sizes = [2, 64], strides = [1, 1]} : vector<2x192xf32> to vector<2x64xf32>
    %250 = vector.extract_strided_slice %241 {offsets = [0, 192], sizes = [2, 64], strides = [1, 1]} : vector<2x256xf32> to vector<2x64xf32>
    %251 = arith.mulf %248, %232 : vector<2x64xf32>
    %252 = arith.mulf %247, %250 : vector<2x64xf32>
    %253 = arith.addf %251, %252 : vector<2x64xf32>
    %254 = math.tanh %253 : vector<2x64xf32>
    %255 = arith.mulf %249, %254 : vector<2x64xf32>
    %256 = vector.extract_strided_slice %211 {offsets = [4, 0], sizes = [2, 256], strides = [1, 1]} : vector<16x256xf32> to vector<2x256xf32>
    %257 = arith.truncf %255 : vector<2x64xf32> to vector<2x64xbf16>
    %cst_48 = arith.constant dense<0.000000e+00> : vector<2x256xf32>
    %258 = tpu.matmul %257, %3, %cst_48 {dimension_numbers = #tpu.dot_dimension_numbers<[1], [0], [0], [1], [0, 0, 1, 1], [], []>} : vector<2x64xbf16>, vector<64x256xbf16>, vector<2x256xf32> -> vector<2x256xf32>
    %259 = arith.addf %256, %258 : vector<2x256xf32>
    %260 = vector.broadcast %13 : vector<1x256xf32> to vector<2x256xf32>
    %261 = arith.mulf %259, %260 : vector<2x256xf32>
    %262 = math.tanh %261 : vector<2x256xf32>
    %263 = vector.extract_strided_slice %262 {offsets = [0, 0], sizes = [2, 192], strides = [1, 1]} : vector<2x256xf32> to vector<2x192xf32>
    %cst_49 = arith.constant 5.000000e-01 : f32
    %264 = vector.broadcast %cst_49 : f32 to vector<2x192xf32>
    %265 = arith.mulf %264, %263 : vector<2x192xf32>
    %cst_50 = arith.constant 5.000000e-01 : f32
    %266 = vector.broadcast %cst_50 : f32 to vector<2x192xf32>
    %267 = arith.addf %265, %266 : vector<2x192xf32>
    %268 = vector.extract_strided_slice %267 {offsets = [0, 0], sizes = [2, 64], strides = [1, 1]} : vector<2x192xf32> to vector<2x64xf32>
    %269 = vector.extract_strided_slice %267 {offsets = [0, 64], sizes = [2, 64], strides = [1, 1]} : vector<2x192xf32> to vector<2x64xf32>
    %270 = vector.extract_strided_slice %267 {offsets = [0, 128], sizes = [2, 64], strides = [1, 1]} : vector<2x192xf32> to vector<2x64xf32>
    %271 = vector.extract_strided_slice %262 {offsets = [0, 192], sizes = [2, 64], strides = [1, 1]} : vector<2x256xf32> to vector<2x64xf32>
    %272 = arith.mulf %269, %253 : vector<2x64xf32>
    %273 = arith.mulf %268, %271 : vector<2x64xf32>
    %274 = arith.addf %272, %273 : vector<2x64xf32>
    %275 = math.tanh %274 : vector<2x64xf32>
    %276 = arith.mulf %270, %275 : vector<2x64xf32>
    %277 = vector.extract_strided_slice %211 {offsets = [6, 0], sizes = [2, 256], strides = [1, 1]} : vector<16x256xf32> to vector<2x256xf32>
    %278 = arith.truncf %276 : vector<2x64xf32> to vector<2x64xbf16>
    %cst_51 = arith.constant dense<0.000000e+00> : vector<2x256xf32>
    %279 = tpu.matmul %278, %3, %cst_51 {dimension_numbers = #tpu.dot_dimension_numbers<[1], [0], [0], [1], [0, 0, 1, 1], [], []>} : vector<2x64xbf16>, vector<64x256xbf16>, vector<2x256xf32> -> vector<2x256xf32>
    %280 = arith.addf %277, %279 : vector<2x256xf32>
    %281 = vector.broadcast %13 : vector<1x256xf32> to vector<2x256xf32>
    %282 = arith.mulf %280, %281 : vector<2x256xf32>
    %283 = math.tanh %282 : vector<2x256xf32>
    %284 = vector.extract_strided_slice %283 {offsets = [0, 0], sizes = [2, 192], strides = [1, 1]} : vector<2x256xf32> to vector<2x192xf32>
    %cst_52 = arith.constant 5.000000e-01 : f32
    %285 = vector.broadcast %cst_52 : f32 to vector<2x192xf32>
    %286 = arith.mulf %285, %284 : vector<2x192xf32>
    %cst_53 = arith.constant 5.000000e-01 : f32
    %287 = vector.broadcast %cst_53 : f32 to vector<2x192xf32>
    %288 = arith.addf %286, %287 : vector<2x192xf32>
    %289 = vector.extract_strided_slice %288 {offsets = [0, 0], sizes = [2, 64], strides = [1, 1]} : vector<2x192xf32> to vector<2x64xf32>
    %290 = vector.extract_strided_slice %288 {offsets = [0, 64], sizes = [2, 64], strides = [1, 1]} : vector<2x192xf32> to vector<2x64xf32>
    %291 = vector.extract_strided_slice %288 {offsets = [0, 128], sizes = [2, 64], strides = [1, 1]} : vector<2x192xf32> to vector<2x64xf32>
    %292 = vector.extract_strided_slice %283 {offsets = [0, 192], sizes = [2, 64], strides = [1, 1]} : vector<2x256xf32> to vector<2x64xf32>
    %293 = arith.mulf %290, %274 : vector<2x64xf32>
    %294 = arith.mulf %289, %292 : vector<2x64xf32>
    %295 = arith.addf %293, %294 : vector<2x64xf32>
    %296 = math.tanh %295 : vector<2x64xf32>
    %297 = arith.mulf %291, %296 : vector<2x64xf32>
    %298 = vector.extract_strided_slice %211 {offsets = [8, 0], sizes = [2, 256], strides = [1, 1]} : vector<16x256xf32> to vector<2x256xf32>
    %299 = arith.truncf %297 : vector<2x64xf32> to vector<2x64xbf16>
    %cst_54 = arith.constant dense<0.000000e+00> : vector<2x256xf32>
    %300 = tpu.matmul %299, %3, %cst_54 {dimension_numbers = #tpu.dot_dimension_numbers<[1], [0], [0], [1], [0, 0, 1, 1], [], []>} : vector<2x64xbf16>, vector<64x256xbf16>, vector<2x256xf32> -> vector<2x256xf32>
    %301 = arith.addf %298, %300 : vector<2x256xf32>
    %302 = vector.broadcast %13 : vector<1x256xf32> to vector<2x256xf32>
    %303 = arith.mulf %301, %302 : vector<2x256xf32>
    %304 = math.tanh %303 : vector<2x256xf32>
    %305 = vector.extract_strided_slice %304 {offsets = [0, 0], sizes = [2, 192], strides = [1, 1]} : vector<2x256xf32> to vector<2x192xf32>
    %cst_55 = arith.constant 5.000000e-01 : f32
    %306 = vector.broadcast %cst_55 : f32 to vector<2x192xf32>
    %307 = arith.mulf %306, %305 : vector<2x192xf32>
    %cst_56 = arith.constant 5.000000e-01 : f32
    %308 = vector.broadcast %cst_56 : f32 to vector<2x192xf32>
    %309 = arith.addf %307, %308 : vector<2x192xf32>
    %310 = vector.extract_strided_slice %309 {offsets = [0, 0], sizes = [2, 64], strides = [1, 1]} : vector<2x192xf32> to vector<2x64xf32>
    %311 = vector.extract_strided_slice %309 {offsets = [0, 64], sizes = [2, 64], strides = [1, 1]} : vector<2x192xf32> to vector<2x64xf32>
    %312 = vector.extract_strided_slice %309 {offsets = [0, 128], sizes = [2, 64], strides = [1, 1]} : vector<2x192xf32> to vector<2x64xf32>
    %313 = vector.extract_strided_slice %304 {offsets = [0, 192], sizes = [2, 64], strides = [1, 1]} : vector<2x256xf32> to vector<2x64xf32>
    %314 = arith.mulf %311, %295 : vector<2x64xf32>
    %315 = arith.mulf %310, %313 : vector<2x64xf32>
    %316 = arith.addf %314, %315 : vector<2x64xf32>
    %317 = math.tanh %316 : vector<2x64xf32>
    %318 = arith.mulf %312, %317 : vector<2x64xf32>
    %319 = vector.extract_strided_slice %211 {offsets = [10, 0], sizes = [2, 256], strides = [1, 1]} : vector<16x256xf32> to vector<2x256xf32>
    %320 = arith.truncf %318 : vector<2x64xf32> to vector<2x64xbf16>
    %cst_57 = arith.constant dense<0.000000e+00> : vector<2x256xf32>
    %321 = tpu.matmul %320, %3, %cst_57 {dimension_numbers = #tpu.dot_dimension_numbers<[1], [0], [0], [1], [0, 0, 1, 1], [], []>} : vector<2x64xbf16>, vector<64x256xbf16>, vector<2x256xf32> -> vector<2x256xf32>
    %322 = arith.addf %319, %321 : vector<2x256xf32>
    %323 = vector.broadcast %13 : vector<1x256xf32> to vector<2x256xf32>
    %324 = arith.mulf %322, %323 : vector<2x256xf32>
    %325 = math.tanh %324 : vector<2x256xf32>
    %326 = vector.extract_strided_slice %325 {offsets = [0, 0], sizes = [2, 192], strides = [1, 1]} : vector<2x256xf32> to vector<2x192xf32>
    %cst_58 = arith.constant 5.000000e-01 : f32
    %327 = vector.broadcast %cst_58 : f32 to vector<2x192xf32>
    %328 = arith.mulf %327, %326 : vector<2x192xf32>
    %cst_59 = arith.constant 5.000000e-01 : f32
    %329 = vector.broadcast %cst_59 : f32 to vector<2x192xf32>
    %330 = arith.addf %328, %329 : vector<2x192xf32>
    %331 = vector.extract_strided_slice %330 {offsets = [0, 0], sizes = [2, 64], strides = [1, 1]} : vector<2x192xf32> to vector<2x64xf32>
    %332 = vector.extract_strided_slice %330 {offsets = [0, 64], sizes = [2, 64], strides = [1, 1]} : vector<2x192xf32> to vector<2x64xf32>
    %333 = vector.extract_strided_slice %330 {offsets = [0, 128], sizes = [2, 64], strides = [1, 1]} : vector<2x192xf32> to vector<2x64xf32>
    %334 = vector.extract_strided_slice %325 {offsets = [0, 192], sizes = [2, 64], strides = [1, 1]} : vector<2x256xf32> to vector<2x64xf32>
    %335 = arith.mulf %332, %316 : vector<2x64xf32>
    %336 = arith.mulf %331, %334 : vector<2x64xf32>
    %337 = arith.addf %335, %336 : vector<2x64xf32>
    %338 = math.tanh %337 : vector<2x64xf32>
    %339 = arith.mulf %333, %338 : vector<2x64xf32>
    %340 = vector.extract_strided_slice %211 {offsets = [12, 0], sizes = [2, 256], strides = [1, 1]} : vector<16x256xf32> to vector<2x256xf32>
    %341 = arith.truncf %339 : vector<2x64xf32> to vector<2x64xbf16>
    %cst_60 = arith.constant dense<0.000000e+00> : vector<2x256xf32>
    %342 = tpu.matmul %341, %3, %cst_60 {dimension_numbers = #tpu.dot_dimension_numbers<[1], [0], [0], [1], [0, 0, 1, 1], [], []>} : vector<2x64xbf16>, vector<64x256xbf16>, vector<2x256xf32> -> vector<2x256xf32>
    %343 = arith.addf %340, %342 : vector<2x256xf32>
    %344 = vector.broadcast %13 : vector<1x256xf32> to vector<2x256xf32>
    %345 = arith.mulf %343, %344 : vector<2x256xf32>
    %346 = math.tanh %345 : vector<2x256xf32>
    %347 = vector.extract_strided_slice %346 {offsets = [0, 0], sizes = [2, 192], strides = [1, 1]} : vector<2x256xf32> to vector<2x192xf32>
    %cst_61 = arith.constant 5.000000e-01 : f32
    %348 = vector.broadcast %cst_61 : f32 to vector<2x192xf32>
    %349 = arith.mulf %348, %347 : vector<2x192xf32>
    %cst_62 = arith.constant 5.000000e-01 : f32
    %350 = vector.broadcast %cst_62 : f32 to vector<2x192xf32>
    %351 = arith.addf %349, %350 : vector<2x192xf32>
    %352 = vector.extract_strided_slice %351 {offsets = [0, 0], sizes = [2, 64], strides = [1, 1]} : vector<2x192xf32> to vector<2x64xf32>
    %353 = vector.extract_strided_slice %351 {offsets = [0, 64], sizes = [2, 64], strides = [1, 1]} : vector<2x192xf32> to vector<2x64xf32>
    %354 = vector.extract_strided_slice %351 {offsets = [0, 128], sizes = [2, 64], strides = [1, 1]} : vector<2x192xf32> to vector<2x64xf32>
    %355 = vector.extract_strided_slice %346 {offsets = [0, 192], sizes = [2, 64], strides = [1, 1]} : vector<2x256xf32> to vector<2x64xf32>
    %356 = arith.mulf %353, %337 : vector<2x64xf32>
    %357 = arith.mulf %352, %355 : vector<2x64xf32>
    %358 = arith.addf %356, %357 : vector<2x64xf32>
    %359 = math.tanh %358 : vector<2x64xf32>
    %360 = arith.mulf %354, %359 : vector<2x64xf32>
    %361 = vector.extract_strided_slice %211 {offsets = [14, 0], sizes = [2, 256], strides = [1, 1]} : vector<16x256xf32> to vector<2x256xf32>
    %362 = arith.truncf %360 : vector<2x64xf32> to vector<2x64xbf16>
    %cst_63 = arith.constant dense<0.000000e+00> : vector<2x256xf32>
    %363 = tpu.matmul %362, %3, %cst_63 {dimension_numbers = #tpu.dot_dimension_numbers<[1], [0], [0], [1], [0, 0, 1, 1], [], []>} : vector<2x64xbf16>, vector<64x256xbf16>, vector<2x256xf32> -> vector<2x256xf32>
    %364 = arith.addf %361, %363 : vector<2x256xf32>
    %365 = vector.broadcast %13 : vector<1x256xf32> to vector<2x256xf32>
    %366 = arith.mulf %364, %365 : vector<2x256xf32>
    %367 = math.tanh %366 : vector<2x256xf32>
    %368 = vector.extract_strided_slice %367 {offsets = [0, 0], sizes = [2, 192], strides = [1, 1]} : vector<2x256xf32> to vector<2x192xf32>
    %cst_64 = arith.constant 5.000000e-01 : f32
    %369 = vector.broadcast %cst_64 : f32 to vector<2x192xf32>
    %370 = arith.mulf %369, %368 : vector<2x192xf32>
    %cst_65 = arith.constant 5.000000e-01 : f32
    %371 = vector.broadcast %cst_65 : f32 to vector<2x192xf32>
    %372 = arith.addf %370, %371 : vector<2x192xf32>
    %373 = vector.extract_strided_slice %372 {offsets = [0, 0], sizes = [2, 64], strides = [1, 1]} : vector<2x192xf32> to vector<2x64xf32>
    %374 = vector.extract_strided_slice %372 {offsets = [0, 64], sizes = [2, 64], strides = [1, 1]} : vector<2x192xf32> to vector<2x64xf32>
    %375 = vector.extract_strided_slice %372 {offsets = [0, 128], sizes = [2, 64], strides = [1, 1]} : vector<2x192xf32> to vector<2x64xf32>
    %376 = vector.extract_strided_slice %367 {offsets = [0, 192], sizes = [2, 64], strides = [1, 1]} : vector<2x256xf32> to vector<2x64xf32>
    %377 = arith.mulf %374, %358 : vector<2x64xf32>
    %378 = arith.mulf %373, %376 : vector<2x64xf32>
    %379 = arith.addf %377, %378 : vector<2x64xf32>
    %380 = math.tanh %379 : vector<2x64xf32>
    %381 = arith.mulf %375, %380 : vector<2x64xf32>
    %cst_66 = arith.constant dense<0.000000e+00> : vector<2x256xf32>
    %382 = tpu.matmul %381, %7, %cst_66 {dimension_numbers = #tpu.dot_dimension_numbers<[1], [0], [0], [1], [0, 0, 1, 1], [], []>} : vector<2x64xf32>, vector<64x256xf32>, vector<2x256xf32> -> vector<2x256xf32>
    %383 = vector.broadcast %6 : vector<1x256xf32> to vector<2x256xf32>
    %384 = arith.addf %382, %383 : vector<2x256xf32>
    %385 = vector.extract_strided_slice %384 {offsets = [0, 0], sizes = [2, 2], strides = [1, 1]} : vector<2x256xf32> to vector<2x2xf32>
    %c0_67 = arith.constant 0 : index
    %c0_68 = arith.constant 0 : index
    %386 = vector.load %arg3[%c0_67, %c0_68] : memref<2x2xf32, #tpu.memory_space<vmem>>, vector<2x2xf32>
    tpu.vector_store %arg3[%c0_67, %c0_68], %385 {strides = array<i32>} : memref<2x2xf32, #tpu.memory_space<vmem>>, vector<2x2xf32>,
    return
  }
}

</mosaic_0001>

<bundles_post_ra>
// kernel: bilstm_forward.1
= control target key start
LH: loop header
LB: loop body
LE: loop exit
PB: predicated region body
PF: predicated region fallthrough
CT: control target
= control target key end

     0   :  { %8 = vsyncpa [#allocation3], 0  ;;  %s2854_s0 = inlined_call_operand.vmem [shape: s32[16,2], index: 0, kind: input, shape index: {}]   ;;  %s2855_s1 = inlined_call_operand.hbm [shape: bf16[512,256], index: 1, kind: input, shape index: {}]   ;;  %s2856_s2 = inlined_call_operand.hbm [shape: f32[72,256], index: 2, kind: input, shape index: {}]   ;;  %s2857_s3 = inlined_call_operand.hbm [shape: f32[2,2], index: 3, kind: output, shape index: {}]  }
   0x1   :  { %9 = vsyncpa [#allocation6], 0 }
   0x2   :  { %10 = vsyncpa [#allocation4], 0  ;;  %s2419_s12 = smov [#allocation2]  }
   0x3   :  { %s18_s13 = sshll.u32 %s2419_s12, 4  ;;  %s19_s13 = int_to_ptr.vmem [resolvable:$true] %s18_s13 }
   0x4   :  { %s2361_s14 = scalar_lea.vmem %s19_s13, 8192  ;;  %p2366_p1 = scmp.lt.s32.totalorder %s19_s13, %s19_s13 }
   0x5   :  { %p2362_p0 = scmp.ne.s32.totalorder %s19_s13, %s2361_s14  ;;  %p2367_p2 = scmp.lt.s32.totalorder %s2361_s14, %s2361_s14 }
   0x7   :  { %p2368_p3 = por %p2367_p2, %p2366_p1 }
   0x9   :  { %p2369_p4 = pnand %p2368_p3, %p2362_p0 }
   0xb   :  { %2372 = shalt.err (!%p2369_p4)
}
   0xc   :  { %s2420_s15 = smov 128   ;;  %s2421_s16 = smov 8  }
   0xd   :  { %24 = dma.hbm_to_vmem [thread:$0]  %s2855_s1, 8192, %s19_s13, [#allocation3], %s2420_s15, %s2420_s15, %s2421_s16  }
   0xe   :  { %s2422_s19 = smov [#allocation5]  }
   0xf   :  { %s30_s20 = sshll.u32 %s2422_s19, 4  ;;  %s31_s20 = int_to_ptr.vmem [resolvable:$true] %s30_s20 }
  0x10   :  { %s2381_s21 = scalar_lea.vmem %s31_s20, 2304  ;;  %p2386_p6 = scmp.lt.s32.totalorder %s31_s20, %s31_s20 }
  0x11   :  { %p2382_p5 = scmp.ne.s32.totalorder %s31_s20, %s2381_s21  ;;  %p2387_p7 = scmp.lt.s32.totalorder %s2381_s21, %s2381_s21 }
  0x13   :  { %p2388_p8 = por %p2387_p7, %p2386_p6 }
  0x15   :  { %p2389_p9 = pnand %p2388_p8, %p2382_p5 }
  0x17   :  { %2392 = shalt.err (!%p2389_p9)
}
  0x18   :  { %s2423_s22 = smov 256   ;;  %s2424_s23 = smov 16  }
  0x19   :  { %36 = dma.hbm_to_vmem [thread:$0]  %s2856_s2, 2304, %s31_s20, [#allocation6], %s2423_s22, %s2423_s22, %s2424_s23  }
  0x1a   :  { %2413 = dma.done.wait [#allocation3], 8192  }
  0x1b   :  { %2414 = vsyncadd [#allocation3], 4294959104 }
  0x1c   :  { %2415 = dma.done.wait [#allocation6], 2304  }
  0x1d   :  { %2416 = vsyncadd [#allocation6], 4294964992  ;;  %v2425_v0 = vmov 1   ;;  %v2426_v1 = vmov 0   ;;  %v136_v2 = vld [vmem:[%s2854_s0] sm:$0xff]  ;;  %v137_v3 = vld [vmem:[%s2854_s0 + $0x8] sm:$0xff]  ;;  %v129_v44 = vlaneseq }
  0x1e   :  { %2139 = vset.pattern.permute.xlu1 %v2425_v0  ;;  %2138 = vset.pattern.permute.xlu0 %v2426_v1  ;;  %v2161_v4 = vld [vmem:[#allocation2 + $0x74] ss:$8 sps:$4 sm:$0xff]   ;;  %v2163_v5 = vld [vmem:[#allocation2 + $0x70] ss:$8 sps:$4 sm:$0xff]   ;;  %v2164_v6 = vld [vmem:[#allocation2 + $0x64] ss:$8 sps:$4 sm:$0xff]  }
  0x1f   :  { %462 = vmatprep.mubr.bf16.mxu1 %v2426_v1  ;;  %149 = vperm.xlu1 %2139, %v136_v2   ;;  %v2166_v7 = vld [vmem:[#allocation2 + $0x60] ss:$8 sps:$4 sm:$0xff]   ;;  %v2167_v8 = vld [vmem:[#allocation2 + $0x54] ss:$8 sps:$4 sm:$0xff]   ;;  %v2169_v9 = vld [vmem:[#allocation2 + $0x50] ss:$8 sps:$4 sm:$0xff]  }
  0x20   :  { %139 = vperm.xlu0 %2138, %v136_v2   ;;  %343 = vmatprep.subr.bf16.mxu0 %v2161_v4  ;;  %v2170_v10 = vld [vmem:[#allocation2 + $0x44] ss:$8 sps:$4 sm:$0xff]   ;;  %v2172_v11 = vld [vmem:[#allocation2 + $0x40] ss:$8 sps:$4 sm:$0xff]   ;;  %v2173_v12 = vld [vmem:[#allocation2 + $0x34] ss:$8 sps:$4 sm:$0xff]  }
  0x21   :  { %344 = vmatpush1.bf16.msra.mxu0 %v2163_v5  ;;  %v2175_v13 = vld [vmem:[#allocation2 + $0x30] ss:$8 sps:$4 sm:$0xff]   ;;  %v2176_v14 = vld [vmem:[#allocation2 + $0x24] ss:$8 sps:$4 sm:$0xff]   ;;  %v2466_v15 = vld [vmem:[#allocation2 + $0x134] ss:$8 sps:$4 sm:$0xff]  }
  0x22   :  { %345 = vmatprep.subr.bf16.mxu0 %v2164_v6  ;;  %v2468_v16 = vld [vmem:[#allocation2 + $0x130] ss:$8 sps:$4 sm:$0xff]   ;;  %438 = vmatprep.subr.bf16.mxu1 %v2466_v15  ;;  %v2471_v17 = vld [vmem:[#allocation2 + $0x124] ss:$8 sps:$4 sm:$0xff]   ;;  %v2178_v18 = vld [vmem:[#allocation2 + $0x20] ss:$8 sps:$4 sm:$0xff]  }
  0x23   :  { %152 = vperm.xlu1 %2139, %v137_v3   ;;  %439 = vmatpush1.bf16.msra.mxu1 %v2468_v16  ;;  %v2474_v19 = vld [vmem:[#allocation2 + $0x120] ss:$8 sps:$4 sm:$0xff]   ;;  %v2179_v20 = vld [vmem:[#allocation2 + $0x14] ss:$8 sps:$4 sm:$0xff]   ;;  %v2181_v22 = vld [vmem:[#allocation2 + $0x10] ss:$8 sps:$4 sm:$0xff]  }
  0x24   :  { %142 = vperm.xlu0 %2138, %v137_v3   ;;  %440 = vmatprep.subr.bf16.mxu1 %v2471_v17  ;;  %v2477_v21 = vld [vmem:[#allocation2 + $0x114] ss:$8 sps:$4 sm:$0xff]   ;;  %v2480_v23 = vld [vmem:[#allocation2 + $0x110] ss:$8 sps:$4 sm:$0xff]   ;;  %v2182_v24 = vld [vmem:[#allocation2 + $0x4] ss:$8 sps:$4 sm:$0xff]  }
  0x25   :  { %346 = vmatpush1.bf16.msra.mxu0 %v2166_v7  ;;  %v2483_v25 = vld [vmem:[#allocation2 + $0x104] ss:$8 sps:$4 sm:$0xff]   ;;  %v2184_v26 = vld [vmem:[#allocation2] ss:$8 sps:$4 sm:$0xff]   ;;  %v2185_v27 = vld [vmem:[#allocation2 + $0xf4] ss:$8 sps:$4 sm:$0xff]  }
  0x26   :  { %347 = vmatprep.subr.bf16.mxu0 %v2167_v8  ;;  %v2485_v28 = vld [vmem:[#allocation2 + $0x100] ss:$8 sps:$4 sm:$0xff]   ;;  %v2187_v29 = vld [vmem:[#allocation2 + $0xf0] ss:$8 sps:$4 sm:$0xff]   ;;  %v2188_v30 = vld [vmem:[#allocation2 + $0xe4] ss:$8 sps:$4 sm:$0xff]  }
  0x27   :  { %441 = vmatpush1.bf16.msra.mxu1 %v2474_v19  ;;  %v2190_v31 = vld [vmem:[#allocation2 + $0xe0] ss:$8 sps:$4 sm:$0xff]   ;;  %v2191_v32 = vld [vmem:[#allocation2 + $0xd4] ss:$8 sps:$4 sm:$0xff]   ;;  %v2193_v33 = vld [vmem:[#allocation2 + $0xd0] ss:$8 sps:$4 sm:$0xff]  }
  0x28   :  { %2160 = vset.pattern.permute.xlu0 %v2425_v0  ;;  %442 = vmatprep.subr.bf16.mxu1 %v2477_v21  ;;  %v2194_v34 = vld [vmem:[#allocation2 + $0xc4] ss:$8 sps:$4 sm:$0xff]   ;;  %v2198_v35 = vld [vmem:[#allocation2 + $0xc0] ss:$8 sps:$4 sm:$0xff]   ;;  %v2200_v36 = vld [vmem:[#allocation2 + $0xb4] ss:$8 sps:$4 sm:$0xff]  }
  0x29   :  { %348 = vmatpush1.bf16.msra.mxu0 %v2169_v9  ;;  %v2204_v37 = vld [vmem:[#allocation2 + $0xb0] ss:$8 sps:$4 sm:$0xff]   ;;  %v2206_v38 = vld [vmem:[#allocation2 + $0xa4] ss:$8 sps:$4 sm:$0xff]   ;;  %v2210_v39 = vld [vmem:[#allocation2 + $0xa0] ss:$8 sps:$4 sm:$0xff]  }
  0x2a   :  { %349 = vmatprep.subr.bf16.mxu0 %v2170_v10  ;;  %v2212_v40 = vld [vmem:[#allocation2 + $0x94] ss:$8 sps:$4 sm:$0xff]   ;;  %v2216_v41 = vld [vmem:[#allocation2 + $0x90] ss:$8 sps:$4 sm:$0xff]   ;;  %v2218_v42 = vld [vmem:[#allocation2 + $0x84] ss:$8 sps:$4 sm:$0xff]  }
  0x2b   :  { %443 = vmatpush1.bf16.msra.mxu1 %v2480_v23  ;;  %v2220_v43 = vld [vmem:[#allocation2 + $0x80] ss:$8 sps:$4 sm:$0xff]   ;;  %v130_v45 = vand.u32 127, %v129_v44  ;;  %v2427_v51 = vmov 1.0|1.0   ;;  %v2511_v56 = vshrl.u32 %v129_v44, 7 }
  0x2c   :  { %444 = vmatprep.subr.bf16.mxu1 %v2483_v25  ;;  %v108_v58 = vld [vmem:[#allocation5] ss:$8 sm:$0x3]  ;;  %v2428_v2 = vmov 1.0   ;;  %s2429_s0 = smov 64   ;;  %vm426_vm15 = vcmask 523264  }
  0x2d   :  { %350 = vmatpush1.bf16.msra.mxu0 %v2172_v11  ;;  %v131_v46 = vadd.s32 128, %v130_v45  ;;  %v179_v57 = vsub.s32 1, %v2511_v56  ;;  %v2515_v59 = vsub.s32 0, %v2511_v56  ;;  %s2431_s2 = smov [#allocation7]  }
  0x2e   :  { %351 = vmatprep.subr.bf16.mxu0 %v2173_v12  ;;  %s2028_s29 = sshll.u32 %s2431_s2, 4  ;;  %s2029_s29 = int_to_ptr.vmem [resolvable:$true] %s2028_s29 }
  0x2f   :  { %445 = vmatpush1.bf16.msra.mxu1 %v2485_v28  ;;  %v2519_v60 = vrot.slane %v108_v58, %v179_v57  ;;  %vm133_vm14 = vcmp.lt.s32.totalorder %v131_v46, 192  ;;  %v176_v63 = vrot.slane %v108_v58, %v2515_v59  ;;  %s2393_s30 = scalar_lea.vmem %s2029_s29, 32  ;;  %p2398_p11 = scmp.lt.s32.totalorder %s2029_s29, %s2029_s29 }
  0x30   :  { %510 = vmatprep.subr.bf16.mxu1 %v2466_v15  ;;  %v2525_v3 = vsel %vm133_vm14, 0.5, %v2428_v2  ;;  %p2394_p10 = scmp.ne.s32.totalorder %s2029_s29, %s2393_s30  ;;  %p2399_p12 = scmp.lt.s32.totalorder %s2393_s30, %s2393_s30 }
  0x31   :  { %352 = vmatpush1.bf16.msra.mxu0 %v2175_v13 }
  0x32   :  { %353 = vmatprep.subr.bf16.mxu0 %v2176_v14  ;;  %463 = vmatmul.mubr.bf16.vlgmr.msra.gmra.mxu1 %v2426_v1  ;;  %p2400_p13 = por %p2399_p12, %p2398_p11 }
  0x33   :  { %511 = vmatpush1.bf16.msra.mxu1 %v2468_v16  ;;  %534 = vmatprep.mubr.bf16.mxu1 %v2426_v1 }
  0x34   :  { %512 = vmatprep.subr.bf16.mxu1 %v2471_v17  ;;  %p2401_p0 = pnand %p2400_p13, %p2394_p10 }
  0x35   :  { %354 = vmatpush1.bf16.msra.mxu0 %v2178_v18 }
  0x36   :  { %355 = vmatprep.subr.bf16.mxu0 %v2179_v20 }
  0x37   :  { %513 = vmatpush1.bf16.msra.mxu1 %v2474_v19 }
  0x38   :  { %514 = vmatprep.subr.bf16.mxu1 %v2477_v21 }
  0x39   :  { %356 = vmatpush1.bf16.msra.mxu0 %v2181_v22 }
  0x3a   :  { %357 = vmatprep.subr.bf16.mxu0 %v2182_v24 }
  0x3b   :  { %515 = vmatpush1.bf16.msra.mxu1 %v2480_v23 }
  0x3c   :  { %516 = vmatprep.subr.bf16.mxu1 %v2483_v25 }
  0x3d   :  { %358 = vmatpush1.bf16.msra.mxu0 %v2184_v26 }
  0x3e   :  { %359 = vmatprep.subr.bf16.mxu0 %v2185_v27 }
  0x3f   :  { %517 = vmatpush1.bf16.msra.mxu1 %v2485_v28 }
  0x40   :  { %593 = vmatprep.subr.bf16.mxu1 %v2466_v15 }
  0x41   :  { %360 = vmatpush2.bf16.msra.mxu0 %v2187_v29 }
  0x42   :  { %361 = vmatprep.subr.bf16.mxu0 %v2188_v30 }
  0x45   :  { %362 = vmatpush2.bf16.msra.mxu0 %v2190_v31 }
  0x46   :  { %363 = vmatprep.subr.bf16.mxu0 %v2191_v32 }
  0x49   :  { %364 = vmatpush2.bf16.msra.mxu0 %v2193_v33 }
  0x4a   :  { %365 = vmatprep.subr.bf16.mxu0 %v2194_v34 }
  0x4d   :  { %366 = vmatpush2.bf16.msra.mxu0 %v2198_v35 }
  0x4e   :  { %367 = vmatprep.subr.bf16.mxu0 %v2200_v36 }
  0x51   :  { %368 = vmatpush2.bf16.msra.mxu0 %v2204_v37 }
  0x52   :  { %369 = vmatprep.subr.bf16.mxu0 %v2206_v38 }
  0x55   :  { %370 = vmatpush2.bf16.msra.mxu0 %v2210_v39 }
  0x56   :  { %371 = vmatprep.subr.bf16.mxu0 %v2212_v40 }
  0x59   :  { %372 = vmatpush2.bf16.msra.mxu0 %v2216_v41 }
  0x5a   :  { %373 = vmatprep.subr.bf16.mxu0 %v2218_v42 }
  0x5d   :  { %374 = vmatpush2.bf16.msra.mxu0 %v2220_v43 }
  0x5e   :  { %759 = vmatprep.subr.bf16.mxu0 %v2466_v15 }
  0x9a   :  { %v150_v47 = vpop.permute.xlu1 %149 }
  0x9b   :  { %v140_v48 = vpop.permute.xlu0 %139  ;;  %vm154_vm0 = vcmp.eq.s32.totalorder %v150_v47, %v130_v45  ;;  %vm155_vm2 = vcmp.eq.s32.totalorder %v150_v47, %v131_v46 }
  0x9c   :  { %vm144_vm1 = vcmp.eq.s32.totalorder %v140_v48, %v130_v45  ;;  %vm145_vm3 = vcmp.eq.s32.totalorder %v140_v48, %v131_v46 }
  0x9d   :  { %vm158_vm4 = vmor %vm144_vm1, %vm154_vm0  ;;  %vm1117_vm0 = vcmask 1041408   ;;  %vm1119_vm1 = vcmask 1043456  }
  0x9e   :  { %v153_v49 = vpop.permute.xlu1 %152  ;;  %vm159_vm9 = vmor %vm145_vm3, %vm155_vm2  ;;  %vm1121_vm2 = vcmask 1045504   ;;  %vm2020_vm3 = vcmask 9216  }
  0x9f   :  { %v143_v50 = vpop.permute.xlu0 %142  ;;  %vm156_vm5 = vcmp.eq.s32.totalorder %v153_v49, %v130_v45  ;;  %vm157_vm6 = vcmp.eq.s32.totalorder %v153_v49, %v131_v46 }
  0xa0   :  { %vm146_vm7 = vcmp.eq.s32.totalorder %v143_v50, %v130_v45  ;;  %vm147_vm8 = vcmp.eq.s32.totalorder %v143_v50, %v131_v46 }
  0xa1   :  { %vm160_vm10 = vmor %vm146_vm7, %vm156_vm5 }
  0xa2   :  { %vm161_vm11 = vmor %vm147_vm8, %vm157_vm6 }
  0xa3   :  { %vm2074_vm12 = vmpackc.low %vm161_vm11, %vm159_vm9 }
  0xa4   :  { %2075 = vmatprep.mubr.msk.bf16.mxu0 %vm2074_vm12, %v2427_v51  ;;  %vm2076_vm13 = vmpackc.low %vm160_vm10, %vm158_vm4 }
  0xa5   :  { %2077 = vmatmul.mubr.msk.bf16.vlgmr.msra.gmra.mxu0 %vm2076_vm13, %v2427_v51 }
  0xa6   :  { %760 = vmatpush1.bf16.msra.mxu0 %v2468_v16  ;;  %783 = vmatprep.mubr.bf16.mxu0 %v2426_v1 }
  0xa7   :  { %761 = vmatprep.subr.bf16.mxu0 %v2471_v17 }
  0xaa   :  { %762 = vmatpush1.bf16.msra.mxu0 %v2474_v19 }
  0xab   :  { %763 = vmatprep.subr.bf16.mxu0 %v2477_v21 }
  0xae   :  { %764 = vmatpush1.bf16.msra.mxu0 %v2480_v23 }
  0xaf   :  { %765 = vmatprep.subr.bf16.mxu0 %v2483_v25 }
  0xb2   :  { %766 = vmatpush1.bf16.msra.mxu0 %v2485_v28 }
  0xb3   :  { %917 = vmatprep.subr.bf16.mxu0 %v2466_v15 }
  0xf2   :  { %v464_v52 = vpop.f32.mrf.mxu1 }
  0xf4   :  { %v466_v53 = vpop.f32.mrf.mxu1 }
  0xf6   :  { %v468_v54 = vpop.f32.mrf.mxu1 }
  0xf8   :  { %v469_v55 = vpop.f32.mrf.mxu1 }
 0x165   :  { %v377_v61 = vpop.f32.mrf.mxu0 }
 0x166   :  { %v2532_v9 = vadd.f32 %v377_v61, %v176_v63 }
 0x167   :  { %v379_v62 = vpop.f32.mrf.mxu0 }
 0x168   :  { %v2523_v0 = vadd.f32 %v379_v62, %v2519_v60  ;;  %v471_v10 = vadd.f32 %v464_v52, %v2532_v9 }
 0x169   :  { %v381_v4 = vpop.f32.mrf.mxu0 }
 0x16a   :  { %v472_v5 = vadd.f32 %v466_v53, %v2523_v0  ;;  %v2528_v6 = vadd.f32 %v381_v4, %v176_v63  ;;  %v473_v11 = vmul.f32 0.5, %v471_v10 }
 0x16c   :  { %v474_v7 = vmul.f32 %v472_v5, %v2525_v3 }
 0x16e   :  { %2257 = vtanh.f32 %v474_v7 }
 0x16f   :  { %2259 = vtanh.f32 %v473_v11 }
 0x17b   :  { %v2258_v8 = vpop.eup %2257 }
 0x17c   :  { %483 = vrot.lane.b32.xlu0 %v2258_v8, %s2429_s0  ;;  %v2260_v12 = vpop.eup %2259  ;;  %v478_v29 = vmul.f32 0.5, %v2258_v8 }
 0x17d   :  { %v477_v13 = vmul.f32 0.5, %v2260_v12 }
 0x17e   :  { %v480_v30 = vadd.f32 0.5, %v478_v29 }
 0x17f   :  { %v479_v14 = vadd.f32 0.5, %v477_v13 }
 0x181   :  { %v481_v22 = vmul.f32 0.0, %v479_v14 }
 0x1ee   :  { %v484_v18 = vpop.permute.xlu0 %483 }
 0x1ef   :  { %v486_v20 = vmul.f32 %v484_v18, %v479_v14 }
 0x1f1   :  { %488 = vrot.lane.b32.xlu1 %v486_v20, %s2429_s0 }
 0x263   :  { %v489_v24 = vpop.permute.xlu1 %488 }
 0x264   :  { %v491_v26 = vadd.f32 %v489_v24, %v481_v22 }
 0x266   :  { %2261 = vtanh.f32 %v491_v26  ;;  %v560_v50 = vrot.slane %v491_v26, 6 }
 0x273   :  { %v2262_v27 = vpop.eup %2261 }
 0x274   :  { %494 = vrot.lane.b32.xlu0 %v2262_v27, %s2429_s0 }
 0x2e6   :  { %v495_v31 = vpop.permute.xlu0 %494 }
 0x2e7   :  { %v2537_v32 = vmul.f32 %v495_v31, %v480_v30 }
 0x2e9   :  { %v498_v33 = vpack.c.bf16 %v2537_v32, %v2537_v32 }
 0x2eb   :  { %2086 = vmatmul.mubr.msk.bf16.vlgmr.msra.gmra.mxu1 %vm426_vm15, %v498_v33 }
 0x2ec   :  { %594 = vmatpush1.bf16.msra.mxu1 %v2468_v16  ;;  %617 = vmatprep.mubr.bf16.mxu1 %v2426_v1 }
 0x2ed   :  { %595 = vmatprep.subr.bf16.mxu1 %v2471_v17 }
 0x2f0   :  { %596 = vmatpush1.bf16.msra.mxu1 %v2474_v19 }
 0x2f1   :  { %597 = vmatprep.subr.bf16.mxu1 %v2477_v21 }
 0x2f4   :  { %598 = vmatpush1.bf16.msra.mxu1 %v2480_v23 }
 0x2f5   :  { %599 = vmatprep.subr.bf16.mxu1 %v2483_v25 }
 0x2f8   :  { %600 = vmatpush1.bf16.msra.mxu1 %v2485_v28 }
 0x2f9   :  { %676 = vmatprep.subr.bf16.mxu1 %v2466_v15 }
 0x3ab   :  { %v536_v34 = vpop.f32.mrf.mxu1 }
 0x3ac   :  { %v545_v42 = vrot.slane %v536_v34, 6 }
 0x3ad   :  { %v538_v35 = vpop.f32.mrf.mxu1 }
 0x3ae   :  { %v546_v36 = vrot.slane %v538_v35, 6  ;;  %v549_v43 = vadd.f32 %v545_v42, %v2532_v9 }
 0x3af   :  { %v540_v37 = vpop.f32.mrf.mxu1 }
 0x3b0   :  { %v550_v38 = vadd.f32 %v546_v36, %v2523_v0  ;;  %v551_v44 = vmul.f32 0.5, %v549_v43 }
 0x3b1   :  { %v541_v39 = vpop.f32.mrf.mxu1 }
 0x3b2   :  { %v552_v40 = vmul.f32 %v550_v38, %v2525_v3 }
 0x3b4   :  { %2263 = vtanh.f32 %v552_v40 }
 0x3b5   :  { %2265 = vtanh.f32 %v551_v44 }
 0x3c1   :  { %v2264_v41 = vpop.eup %2263 }
 0x3c2   :  { %564 = vrot.lane.b32.xlu1 %v2264_v41, %s2429_s0  ;;  %v2266_v45 = vpop.eup %2265  ;;  %v556_v55 = vmul.f32 0.5, %v2264_v41 }
 0x3c3   :  { %v555_v46 = vmul.f32 0.5, %v2266_v45 }
 0x3c4   :  { %v558_v58 = vadd.f32 0.5, %v556_v55 }
 0x3c5   :  { %v557_v47 = vadd.f32 0.5, %v555_v46 }
 0x3c7   :  { %v562_v51 = vmul.f32 %v560_v50, %v557_v47 }
 0x434   :  { %v565_v48 = vpop.permute.xlu1 %564 }
 0x435   :  { %v567_v49 = vmul.f32 %v565_v48, %v557_v47 }
 0x437   :  { %569 = vrot.lane.b32.xlu0 %v567_v49, %s2429_s0 }
 0x4a9   :  { %v570_v52 = vpop.permute.xlu0 %569 }
 0x4aa   :  { %v572_v53 = vadd.f32 %v570_v52, %v562_v51 }
 0x4ac   :  { %2267 = vtanh.f32 %v572_v53  ;;  %v643_v30 = vrot.slane %v572_v53, 6 }
 0x4b9   :  { %v2268_v54 = vpop.eup %2267 }
 0x4ba   :  { %575 = vrot.lane.b32.xlu1 %v2268_v54, %s2429_s0 }
 0x52c   :  { %v576_v61 = vpop.permute.xlu1 %575 }
 0x52d   :  { %v2557_v62 = vmul.f32 %v576_v61, %v558_v58 }
 0x52f   :  { %v579_v63 = vpack.c.bf16 %v2557_v62, %v2557_v62 }
 0x531   :  { %v581_v2 = vrot.slane %v579_v63, 1 }
 0x533   :  { %2087 = vmatmul.mubr.msk.bf16.vlgmr.msra.gmra.mxu1 %vm426_vm15, %v581_v2 }
 0x534   :  { %677 = vmatpush1.bf16.msra.mxu1 %v2468_v16  ;;  %700 = vmatprep.mubr.bf16.mxu1 %v2426_v1 }
 0x535   :  { %678 = vmatprep.subr.bf16.mxu1 %v2471_v17 }
 0x538   :  { %679 = vmatpush1.bf16.msra.mxu1 %v2474_v19 }
 0x539   :  { %680 = vmatprep.subr.bf16.mxu1 %v2477_v21 }
 0x53c   :  { %681 = vmatpush1.bf16.msra.mxu1 %v2480_v23 }
 0x53d   :  { %682 = vmatprep.subr.bf16.mxu1 %v2483_v25 }
 0x540   :  { %683 = vmatpush1.bf16.msra.mxu1 %v2485_v28 }
 0x541   :  { %834 = vmatprep.subr.bf16.mxu1 %v2466_v15 }
 0x5f3   :  { %v619_v4 = vpop.f32.mrf.mxu1 }
 0x5f4   :  { %v628_v14 = vrot.slane %v619_v4, 4 }
 0x5f5   :  { %v621_v5 = vpop.f32.mrf.mxu1 }
 0x5f6   :  { %v629_v7 = vrot.slane %v621_v5, 4  ;;  %v632_v18 = vadd.f32 %v628_v14, %v2532_v9 }
 0x5f7   :  { %v623_v8 = vpop.f32.mrf.mxu1 }
 0x5f8   :  { %v633_v10 = vadd.f32 %v629_v7, %v2523_v0  ;;  %v634_v20 = vmul.f32 0.5, %v632_v18 }
 0x5f9   :  { %v624_v11 = vpop.f32.mrf.mxu1 }
 0x5fa   :  { %v635_v12 = vmul.f32 %v633_v10, %v2525_v3 }
 0x5fc   :  { %2269 = vtanh.f32 %v635_v12  ;;  %v383_v12 = vpop.f32.mrf.mxu0 }
 0x5fd   :  { %2271 = vtanh.f32 %v634_v20  ;;  %v2611_v14 = vadd.f32 %v383_v12, %v2519_v60 }
 0x609   :  { %v2270_v13 = vpop.eup %2269 }
 0x60a   :  { %647 = vrot.lane.b32.xlu0 %v2270_v13, %s2429_s0  ;;  %v2272_v22 = vpop.eup %2271  ;;  %v639_v36 = vmul.f32 0.5, %v2270_v13 }
 0x60b   :  { %v638_v24 = vmul.f32 0.5, %v2272_v22 }
 0x60c   :  { %v641_v37 = vadd.f32 0.5, %v639_v36 }
 0x60d   :  { %v640_v26 = vadd.f32 0.5, %v638_v24 }
 0x60f   :  { %v645_v31 = vmul.f32 %v643_v30, %v640_v26 }
 0x67c   :  { %v648_v27 = vpop.permute.xlu0 %647 }
 0x67d   :  { %v650_v29 = vmul.f32 %v648_v27, %v640_v26 }
 0x67f   :  { %652 = vrot.lane.b32.xlu1 %v650_v29, %s2429_s0 }
 0x6f1   :  { %v653_v33 = vpop.permute.xlu1 %652 }
 0x6f2   :  { %v655_v34 = vadd.f32 %v653_v33, %v645_v31 }
 0x6f4   :  { %2273 = vtanh.f32 %v655_v34 }
 0x701   :  { %v2274_v35 = vpop.eup %2273 }
 0x702   :  { %658 = vrot.lane.b32.xlu0 %v2274_v35, %s2429_s0 }
 0x774   :  { %v659_v38 = vpop.permute.xlu0 %658 }
 0x775   :  { %v2577_v39 = vmul.f32 %v659_v38, %v641_v37 }
 0x777   :  { %v662_v40 = vpack.c.bf16 %v2577_v39, %v2577_v39 }
 0x779   :  { %v664_v41 = vrot.slane %v662_v40, 2 }
 0x77b   :  { %2088 = vmatmul.mubr.msk.bf16.vlgmr.msra.gmra.mxu1 %vm426_vm15, %v664_v41 }
 0x77c   :  { %835 = vmatpush1.bf16.msra.mxu1 %v2468_v16  ;;  %858 = vmatprep.mubr.bf16.mxu1 %v2426_v1 }
 0x77d   :  { %836 = vmatprep.subr.bf16.mxu1 %v2471_v17 }
 0x780   :  { %837 = vmatpush1.bf16.msra.mxu1 %v2474_v19 }
 0x781   :  { %838 = vmatprep.subr.bf16.mxu1 %v2477_v21 }
 0x784   :  { %839 = vmatpush1.bf16.msra.mxu1 %v2480_v23 }
 0x785   :  { %840 = vmatprep.subr.bf16.mxu1 %v2483_v25 }
 0x788   :  { %841 = vmatpush1.bf16.msra.mxu1 %v2485_v28 }
 0x789   :  { %1000 = vmatprep.subr.bf16.mxu1 %v2466_v15 }
 0x83b   :  { %v702_v42 = vpop.f32.mrf.mxu1 }
 0x83c   :  { %v711_v50 = vrot.slane %v702_v42, 2 }
 0x83d   :  { %v704_v43 = vpop.f32.mrf.mxu1 }
 0x83e   :  { %v712_v44 = vrot.slane %v704_v43, 2  ;;  %v715_v51 = vadd.f32 %v711_v50, %v2532_v9 }
 0x83f   :  { %v706_v45 = vpop.f32.mrf.mxu1 }
 0x840   :  { %v716_v46 = vadd.f32 %v712_v44, %v2523_v0  ;;  %v717_v52 = vmul.f32 0.5, %v715_v51  ;;  %v726_v0 = vrot.slane %v655_v34, 6 }
 0x841   :  { %v707_v47 = vpop.f32.mrf.mxu1 }
 0x842   :  { %v718_v48 = vmul.f32 %v716_v46, %v2525_v3 }
 0x844   :  { %2275 = vtanh.f32 %v718_v48 }
 0x845   :  { %2277 = vtanh.f32 %v717_v52 }
 0x851   :  { %v2276_v49 = vpop.eup %2275 }
 0x852   :  { %730 = vrot.lane.b32.xlu1 %v2276_v49, %s2429_s0  ;;  %v2278_v53 = vpop.eup %2277  ;;  %v722_v5 = vmul.f32 0.5, %v2276_v49 }
 0x853   :  { %v721_v15 = vmul.f32 0.5, %v2278_v53 }
 0x854   :  { %v724_v7 = vadd.f32 0.5, %v722_v5 }
 0x855   :  { %v723_v54 = vadd.f32 0.5, %v721_v15 }
 0x857   :  { %v728_v61 = vmul.f32 %v726_v0, %v723_v54 }
 0x8c4   :  { %v731_v55 = vpop.permute.xlu1 %730 }
 0x8c5   :  { %v733_v58 = vmul.f32 %v731_v55, %v723_v54 }
 0x8c7   :  { %735 = vrot.lane.b32.xlu0 %v733_v58, %s2429_s0 }
 0x939   :  { %v736_v63 = vpop.permute.xlu0 %735 }
 0x93a   :  { %v738_v2 = vadd.f32 %v736_v63, %v728_v61 }
 0x93c   :  { %2279 = vtanh.f32 %v738_v2  ;;  %v803_v36 = vrot.slane %v738_v2, 6 }
 0x949   :  { %v2280_v4 = vpop.eup %2279 }
 0x94a   :  { %741 = vrot.lane.b32.xlu1 %v2280_v4, %s2429_s0 }
 0x9bc   :  { %v742_v9 = vpop.permute.xlu1 %741 }
 0x9bd   :  { %v2597_v8 = vmul.f32 %v742_v9, %v724_v7 }
 0x9bf   :  { %v745_v10 = vpack.c.bf16 %v2597_v8, %v2597_v8 }
 0x9c1   :  { %v747_v11 = vrot.slane %v745_v10, 3 }
 0x9c3   :  { %2089 = vmatmul.mubr.msk.bf16.vlgmr.msra.gmra.mxu0 %vm426_vm15, %v747_v11 }
 0x9c4   :  { %918 = vmatpush1.bf16.msra.mxu0 %v2468_v16  ;;  %941 = vmatprep.mubr.bf16.mxu0 %v2426_v1 }
 0x9c5   :  { %919 = vmatprep.subr.bf16.mxu0 %v2471_v17 }
 0x9c8   :  { %920 = vmatpush1.bf16.msra.mxu0 %v2474_v19 }
 0x9c9   :  { %921 = vmatprep.subr.bf16.mxu0 %v2477_v21 }
 0x9cc   :  { %922 = vmatpush1.bf16.msra.mxu0 %v2480_v23 }
 0x9cd   :  { %923 = vmatprep.subr.bf16.mxu0 %v2483_v25 }
 0x9d0   :  { %924 = vmatpush1.bf16.msra.mxu0 %v2485_v28 }
 0xa83   :  { %v785_v13 = vpop.f32.mrf.mxu0 }
 0xa84   :  { %v792_v29 = vadd.f32 %v785_v13, %v2528_v6 }
 0xa85   :  { %v787_v18 = vpop.f32.mrf.mxu0 }
 0xa86   :  { %v793_v20 = vadd.f32 %v787_v18, %v2611_v14  ;;  %v794_v30 = vmul.f32 0.5, %v792_v29 }
 0xa87   :  { %v789_v22 = vpop.f32.mrf.mxu0 }
 0xa88   :  { %v795_v24 = vmul.f32 %v793_v20, %v2525_v3 }
 0xa89   :  { %v790_v26 = vpop.f32.mrf.mxu0 }
 0xa8a   :  { %2281 = vtanh.f32 %v795_v24 }
 0xa8b   :  { %2283 = vtanh.f32 %v794_v30 }
 0xa97   :  { %v2282_v27 = vpop.eup %2281 }
 0xa98   :  { %807 = vrot.lane.b32.xlu0 %v2282_v27, %s2429_s0  ;;  %v2284_v31 = vpop.eup %2283  ;;  %v799_v42 = vmul.f32 0.5, %v2282_v27 }
 0xa99   :  { %v798_v33 = vmul.f32 0.5, %v2284_v31 }
 0xa9a   :  { %v801_v43 = vadd.f32 0.5, %v799_v42 }
 0xa9b   :  { %v800_v34 = vadd.f32 0.5, %v798_v33 }
 0xa9d   :  { %v805_v37 = vmul.f32 %v803_v36, %v800_v34 }
 0xb0a   :  { %v808_v60 = vpop.permute.xlu0 %807 }
 0xb0b   :  { %v810_v35 = vmul.f32 %v808_v60, %v800_v34 }
 0xb0d   :  { %812 = vrot.lane.b32.xlu1 %v810_v35, %s2429_s0 }
 0xb7f   :  { %v813_v38 = vpop.permute.xlu1 %812 }
 0xb80   :  { %v815_v40 = vadd.f32 %v813_v38, %v805_v37 }
 0xb82   :  { %2285 = vtanh.f32 %v815_v40  ;;  %v884_v55 = vrot.slane %v815_v40, 6 }
 0xb8f   :  { %v2286_v41 = vpop.eup %2285 }
 0xb90   :  { %818 = vrot.lane.b32.xlu0 %v2286_v41, %s2429_s0 }
 0xc02   :  { %v819_v44 = vpop.permute.xlu0 %818 }
 0xc03   :  { %v2619_v45 = vmul.f32 %v819_v44, %v801_v43 }
 0xc05   :  { %v822_v46 = vpack.c.bf16 %v2619_v45, %v2619_v45 }
 0xc07   :  { %2090 = vmatmul.mubr.msk.bf16.vlgmr.msra.gmra.mxu1 %vm426_vm15, %v822_v46 }
 0xc08   :  { %1001 = vmatpush1.bf16.msra.mxu1 %v2468_v16  ;;  %1024 = vmatprep.mubr.bf16.mxu1 %v2426_v1 }
 0xc09   :  { %1002 = vmatprep.subr.bf16.mxu1 %v2471_v17 }
 0xc0c   :  { %1003 = vmatpush1.bf16.msra.mxu1 %v2474_v19 }
 0xc0d   :  { %1004 = vmatprep.subr.bf16.mxu1 %v2477_v21 }
 0xc10   :  { %1005 = vmatpush1.bf16.msra.mxu1 %v2480_v23 }
 0xc11   :  { %1006 = vmatprep.subr.bf16.mxu1 %v2483_v25 }
 0xc14   :  { %1007 = vmatpush1.bf16.msra.mxu1 %v2485_v28 }
 0xcc7   :  { %v860_v47 = vpop.f32.mrf.mxu1 }
 0xcc8   :  { %v869_v19 = vrot.slane %v860_v47, 6 }
 0xcc9   :  { %v862_v48 = vpop.f32.mrf.mxu1 }
 0xcca   :  { %v870_v49 = vrot.slane %v862_v48, 6  ;;  %v873_v21 = vadd.f32 %v869_v19, %v2528_v6 }
 0xccb   :  { %v864_v50 = vpop.f32.mrf.mxu1 }
 0xccc   :  { %v874_v16 = vadd.f32 %v870_v49, %v2611_v14  ;;  %v875_v23 = vmul.f32 0.5, %v873_v21 }
 0xccd   :  { %v865_v51 = vpop.f32.mrf.mxu1 }
 0xcce   :  { %v876_v52 = vmul.f32 %v874_v16, %v2525_v3 }
 0xcd0   :  { %2287 = vtanh.f32 %v876_v52 }
 0xcd1   :  { %2289 = vtanh.f32 %v875_v23 }
 0xcdd   :  { %v2288_v17 = vpop.eup %2287 }
 0xcde   :  { %888 = vrot.lane.b32.xlu1 %v2288_v17, %s2429_s0  ;;  %v2290_v25 = vpop.eup %2289  ;;  %v880_v2 = vmul.f32 0.5, %v2288_v17 }
 0xcdf   :  { %v879_v28 = vmul.f32 0.5, %v2290_v25 }
 0xce0   :  { %v882_v4 = vadd.f32 0.5, %v880_v2  ;;  %v2221_v2 = vld [vmem:[#allocation2 + $0x1b0] ss:$8 sps:$4 sm:$0xff]  }
 0xce1   :  { %v881_v53 = vadd.f32 0.5, %v879_v28 }
 0xce3   :  { %v886_v58 = vmul.f32 %v884_v55, %v881_v53 }
 0xd50   :  { %v889_v15 = vpop.permute.xlu1 %888 }
 0xd51   :  { %v891_v54 = vmul.f32 %v889_v15, %v881_v53 }
 0xd53   :  { %893 = vrot.lane.b32.xlu0 %v891_v54, %s2429_s0 }
 0xdc5   :  { %v894_v0 = vpop.permute.xlu0 %893 }
 0xdc6   :  { %v896_v61 = vadd.f32 %v894_v0, %v886_v58 }
 0xdc8   :  { %2291 = vtanh.f32 %v896_v61  ;;  %v967_v36 = vrot.slane %v896_v61, 6 }
 0xdd5   :  { %v2292_v63 = vpop.eup %2291 }
 0xdd6   :  { %899 = vrot.lane.b32.xlu1 %v2292_v63, %s2429_s0 }
 0xe48   :  { %v900_v5 = vpop.permute.xlu1 %899 }
 0xe49   :  { %v2638_v7 = vmul.f32 %v900_v5, %v882_v4  ;;  %v2223_v4 = vld [vmem:[#allocation2 + $0x1b4] ss:$8 sps:$4 sm:$0xff]   ;;  %v1094_v5 = vrot.slane %v2597_v8, 6 }
 0xe4a   :  { %1218 = vmatprep.subr.bf16.mxu0 %v2223_v4 }
 0xe4b   :  { %v903_v9 = vpack.c.bf16 %v2638_v7, %v2638_v7 }
 0xe4d   :  { %v905_v10 = vrot.slane %v903_v9, 1  ;;  %v2226_v9 = vld [vmem:[#allocation2 + $0x1a4] ss:$8 sps:$4 sm:$0xff]  }
 0xe4f   :  { %2091 = vmatmul.mubr.msk.bf16.vlgmr.msra.gmra.mxu0 %vm426_vm15, %v905_v10  ;;  %v2662_v10 = vld [vmem:[#allocation2 + $0x1f4] ss:$8 sps:$4 sm:$0xff]  }
 0xe50   :  { %1250 = vmatprep.mubr.bf16.mxu0 %v2426_v1  ;;  %1219 = vmatpush1.bf16.msra.mxu0 %v2221_v2 }
 0xe51   :  { %1220 = vmatprep.subr.bf16.mxu0 %v2226_v9  ;;  %1309 = vmatprep.subr.bf16.mxu1 %v2662_v10 }
 0xf0f   :  { %v943_v11 = vpop.f32.mrf.mxu0 }
 0xf10   :  { %v952_v27 = vrot.slane %v943_v11, 4  ;;  %v1100_v11 = vrot.slane %v2577_v39, 2 }
 0xf11   :  { %v945_v12 = vpop.f32.mrf.mxu0 }
 0xf12   :  { %v953_v13 = vrot.slane %v945_v12, 4  ;;  %v956_v29 = vadd.f32 %v952_v27, %v2528_v6  ;;  %v2224_v12 = vld [vmem:[#allocation2 + $0x1a0] ss:$8 sps:$4 sm:$0xff]   ;;  %v2676_v27 = vld [vmem:[#allocation2 + $0x1d4] ss:$8 sps:$4 sm:$0xff]  }
 0xf13   :  { %v947_v18 = vpop.f32.mrf.mxu0  ;;  %1221 = vmatpush1.bf16.msra.mxu0 %v2224_v12 }
 0xf14   :  { %v957_v20 = vadd.f32 %v953_v13, %v2611_v14  ;;  %v958_v30 = vmul.f32 0.5, %v956_v29  ;;  %v2666_v13 = vld [vmem:[#allocation2 + $0x1f0] ss:$8 sps:$4 sm:$0xff]   ;;  %v2229_v18 = vld [vmem:[#allocation2 + $0x194] ss:$8 sps:$4 sm:$0xff]   ;;  %v1112_v29 = vrot.slane %v2537_v32, 2 }
 0xf15   :  { %v948_v22 = vpop.f32.mrf.mxu0  ;;  %1222 = vmatprep.subr.bf16.mxu0 %v2229_v18 }
 0xf16   :  { %v959_v24 = vmul.f32 %v957_v20, %v2525_v3  ;;  %v2669_v20 = vld [vmem:[#allocation2 + $0x1e4] ss:$8 sps:$4 sm:$0xff]   ;;  %v1088_v22 = vrot.slane %v2619_v45, 2 }
 0xf18   :  { %2293 = vtanh.f32 %v959_v24  ;;  %v2140_v24 = vpack.i.bf16 %v1100_v11, %v1094_v5 }
 0xf19   :  { %2295 = vtanh.f32 %v958_v30  ;;  %v2227_v30 = vld [vmem:[#allocation2 + $0x190] ss:$8 sps:$4 sm:$0xff]  }
 0xf1a   :  { %1223 = vmatpush1.bf16.msra.mxu0 %v2227_v30 }
 0xf25   :  { %v2294_v26 = vpop.eup %2293 }
 0xf26   :  { %971 = vrot.lane.b32.xlu0 %v2294_v26, %s2429_s0  ;;  %v2296_v31 = vpop.eup %2295  ;;  %v963_v42 = vmul.f32 0.5, %v2294_v26  ;;  %v2673_v26 = vld [vmem:[#allocation2 + $0x1e0] ss:$8 sps:$4 sm:$0xff]  }
 0xf27   :  { %v962_v33 = vmul.f32 0.5, %v2296_v31  ;;  %v2232_v31 = vld [vmem:[#allocation2 + $0x184] ss:$8 sps:$4 sm:$0xff]  }
 0xf28   :  { %v965_v43 = vadd.f32 0.5, %v963_v42  ;;  %1224 = vmatprep.subr.bf16.mxu0 %v2232_v31  ;;  %v2686_v42 = vld [vmem:[#allocation2 + $0x1c4] ss:$8 sps:$4 sm:$0xff]  }
 0xf29   :  { %v964_v34 = vadd.f32 0.5, %v962_v33  ;;  %v2155_v33 = vpack.i.bf16 %v1112_v29, %v1088_v22 }
 0xf2b   :  { %v969_v37 = vmul.f32 %v967_v36, %v964_v34  ;;  %v2244_v36 = vld [vmem:[#allocation2 + $0x164] ss:$8 sps:$4 sm:$0xff]  }
 0xf98   :  { %v972_v60 = vpop.permute.xlu0 %971 }
 0xf99   :  { %v974_v35 = vmul.f32 %v972_v60, %v964_v34  ;;  %v2230_v34 = vld [vmem:[#allocation2 + $0x180] ss:$8 sps:$4 sm:$0xff]   ;;  %v2238_v60 = vld [vmem:[#allocation2 + $0x174] ss:$8 sps:$4 sm:$0xff]  }
 0xf9a   :  { %1225 = vmatpush1.bf16.msra.mxu0 %v2230_v34 }
 0xf9b   :  { %976 = vrot.lane.b32.xlu1 %v974_v35, %s2429_s0  ;;  %v2236_v35 = vld [vmem:[#allocation2 + $0x170] ss:$8 sps:$4 sm:$0xff]   ;;  %1226 = vmatprep.subr.bf16.mxu0 %v2238_v60 }
 0xf9e   :  { %1227 = vmatpush1.bf16.msra.mxu0 %v2236_v35 }
 0xf9f   :  { %1228 = vmatprep.subr.bf16.mxu0 %v2244_v36 }
0x100d   :  { %v977_v38 = vpop.permute.xlu1 %976 }
0x100e   :  { %v979_v40 = vadd.f32 %v977_v38, %v969_v37  ;;  %v2242_v37 = vld [vmem:[#allocation2 + $0x160] ss:$8 sps:$4 sm:$0xff]   ;;  %v2683_v38 = vld [vmem:[#allocation2 + $0x1d0] ss:$8 sps:$4 sm:$0xff]  }
0x100f   :  { %1229 = vmatpush1.bf16.msra.mxu0 %v2242_v37 }
0x1010   :  { %2297 = vtanh.f32 %v979_v40 }
0x101d   :  { %v2298_v41 = vpop.eup %2297 }
0x101e   :  { %982 = vrot.lane.b32.xlu0 %v2298_v41, %s2429_s0  ;;  %v2250_v41 = vld [vmem:[#allocation2 + $0x154] ss:$8 sps:$4 sm:$0xff]  }
0x101f   :  { %1230 = vmatprep.subr.bf16.mxu0 %v2250_v41 }
0x1090   :  { %v983_v44 = vpop.permute.xlu0 %982 }
0x1091   :  { %v2650_v46 = vmul.f32 %v983_v44, %v965_v43  ;;  %v2248_v43 = vld [vmem:[#allocation2 + $0x150] ss:$8 sps:$4 sm:$0xff]   ;;  %v2688_v44 = vld [vmem:[#allocation2 + $0x1c0] ss:$8 sps:$4 sm:$0xff]  }
0x1092   :  { %1231 = vmatpush1.bf16.msra.mxu0 %v2248_v43 }
0x1093   :  { %v986_v47 = vpack.c.bf16 %v2650_v46, %v2650_v46 }
0x1095   :  { %v988_v48 = vrot.slane %v986_v47, 2 }
0x1097   :  { %2092 = vmatmul.mubr.msk.bf16.vlgmr.msra.gmra.mxu1 %vm426_vm15, %v988_v48 }
0x1098   :  { %1333 = vmatprep.mubr.bf16.mxu1 %v2426_v1  ;;  %1310 = vmatpush1.bf16.msra.mxu1 %v2666_v13 }
0x1099   :  { %1311 = vmatprep.subr.bf16.mxu1 %v2669_v20 }
0x109c   :  { %1312 = vmatpush1.bf16.msra.mxu1 %v2673_v26 }
0x109d   :  { %1313 = vmatprep.subr.bf16.mxu1 %v2676_v27 }
0x10a0   :  { %1314 = vmatpush1.bf16.msra.mxu1 %v2683_v38 }
0x10a1   :  { %1315 = vmatprep.subr.bf16.mxu1 %v2686_v42 }
0x10a4   :  { %1316 = vmatpush1.bf16.msra.mxu1 %v2688_v44 }
0x10a5   :  { %1381 = vmatprep.subr.bf16.mxu1 %v2662_v10 }
0x10a7   :  { %1334 = vmatmul.mubr.bf16.vlgmr.msra.gmra.mxu1 %v2426_v1 }
0x10a8   :  { %1382 = vmatpush1.bf16.msra.mxu1 %v2666_v13  ;;  %1405 = vmatprep.mubr.bf16.mxu1 %v2426_v1 }
0x10a9   :  { %1383 = vmatprep.subr.bf16.mxu1 %v2669_v20 }
0x10ac   :  { %1384 = vmatpush1.bf16.msra.mxu1 %v2673_v26 }
0x10ad   :  { %1385 = vmatprep.subr.bf16.mxu1 %v2676_v27 }
0x10b0   :  { %1386 = vmatpush1.bf16.msra.mxu1 %v2683_v38 }
0x10b1   :  { %1387 = vmatprep.subr.bf16.mxu1 %v2686_v42 }
0x10b4   :  { %1388 = vmatpush1.bf16.msra.mxu1 %v2688_v44 }
0x10b5   :  { %1547 = vmatprep.subr.bf16.mxu1 %v2662_v10 }
0x1157   :  { %v1026_v49 = vpop.f32.mrf.mxu1 }
0x1158   :  { %v1035_v23 = vrot.slane %v1026_v49, 2  ;;  %v2256_v49 = vld [vmem:[#allocation2 + $0x144] ss:$8 sps:$4 sm:$0xff]  }
0x1159   :  { %v1028_v50 = vpop.f32.mrf.mxu1  ;;  %1232 = vmatprep.subr.bf16.mxu0 %v2256_v49 }
0x115a   :  { %v1036_v16 = vrot.slane %v1028_v50, 2  ;;  %v1039_v25 = vadd.f32 %v1035_v23, %v2528_v6 }
0x115b   :  { %v1030_v51 = vpop.f32.mrf.mxu1 }
0x115c   :  { %v1040_v52 = vadd.f32 %v1036_v16, %v2611_v14  ;;  %v1041_v28 = vmul.f32 0.5, %v1039_v25  ;;  %v1050_v14 = vrot.slane %v979_v40, 6  ;;  %v2254_v16 = vld [vmem:[#allocation2 + $0x140] ss:$8 sps:$4 sm:$0xff]   ;;  %v1076_v51 = vrot.slane %v2650_v46, 2 }
0x115d   :  { %v1031_v17 = vpop.f32.mrf.mxu1  ;;  %1233 = vmatpush1.bf16.msra.mxu0 %v2254_v16 }
0x115e   :  { %v1042_v19 = vmul.f32 %v1040_v52, %v2525_v3  ;;  %v1082_v17 = vrot.slane %v2638_v7, 6  ;;  %1464 = vmatprep.subr.bf16.mxu0 %v2662_v10 }
0x1160   :  { %2299 = vtanh.f32 %v1042_v19 }
0x1161   :  { %2301 = vtanh.f32 %v1041_v28 }
0x116d   :  { %v2300_v21 = vpop.eup %2299 }
0x116e   :  { %1054 = vrot.lane.b32.xlu1 %v2300_v21, %s2429_s0  ;;  %v2302_v53 = vpop.eup %2301  ;;  %v1046_v40 = vmul.f32 0.5, %v2300_v21  ;;  %v1106_v21 = vrot.slane %v2557_v62, 6 }
0x116f   :  { %v1045_v15 = vmul.f32 0.5, %v2302_v53 }
0x1170   :  { %v1048_v47 = vadd.f32 0.5, %v1046_v40  ;;  %v2150_v23 = vpack.i.bf16 %v1106_v21, %v1082_v17 }
0x1171   :  { %v1047_v54 = vadd.f32 0.5, %v1045_v15 }
0x1173   :  { %v1052_v0 = vmul.f32 %v1050_v14, %v1047_v54 }
0x11e0   :  { %v1055_v55 = vpop.permute.xlu1 %1054 }
0x11e1   :  { %v1057_v58 = vmul.f32 %v1055_v55, %v1047_v54 }
0x11e3   :  { %1059 = vrot.lane.b32.xlu0 %v1057_v58, %s2429_s0 }
0x1255   :  { %v1060_v61 = vpop.permute.xlu0 %1059 }
0x1256   :  { %v1062_v63 = vadd.f32 %v1060_v61, %v1052_v0 }
0x1258   :  { %2303 = vtanh.f32 %v1062_v63 }
0x1265   :  { %v2304_v6 = vpop.eup %2303 }
0x1266   :  { %1065 = vrot.lane.b32.xlu1 %v2304_v6, %s2429_s0 }
0x126a   :  { %2141 = vrot.lane.b32.xlu1 %v2140_v24, %s2429_s0 }
0x126e   :  { %2156 = vrot.lane.b32.xlu1 %v2155_v33, %s2429_s0  ;;  %v110_v33 = vld [vmem:[#allocation5 + $0x1] ss:$8 sm:$0x3] }
0x126f   :  { %v2735_v34 = vrot.slane %v110_v33, %v179_v57  ;;  %v1131_v36 = vrot.slane %v110_v33, %v2515_v59 }
0x12d8   :  { %v1066_v48 = vpop.permute.xlu1 %1065 }
0x12d9   :  { %v1068_v50 = vmul.f32 %v1066_v48, %v1048_v47 }
0x12db   :  { %v1070_v52 = vrot.slane %v1068_v50, 6 }
0x12dc   :  { %v2142_v25 = vpop.permute.xlu1 %2141 }
0x12dd   :  { %v2145_v19 = vpack.i.bf16 %v1076_v51, %v1070_v52  ;;  %v2144_v28 = vunpack.i.h.bf16 %v2142_v25  ;;  %v2143_v53 = vunpack.i.l.bf16 %v2142_v25 }
0x12df   :  { %2146 = vrot.lane.b32.xlu0 %v2145_v19, %s2429_s0  ;;  %v1104_v14 = vsel %vm426_vm15, %v2638_v7, %v2144_v28  ;;  %v1098_v0 = vsel %vm426_vm15, %v2619_v45, %v2143_v53 }
0x12e0   :  { %v2157_v54 = vpop.permute.xlu1 %2156  ;;  %v1123_v11 = vsel %vm1117_vm0, %v1098_v0, %v1104_v14 }
0x12e1   :  { %v2159_v61 = vunpack.i.h.bf16 %v2157_v54  ;;  %v2158_v63 = vunpack.i.l.bf16 %v2157_v54 }
0x12e3   :  { %2151 = vrot.lane.b32.xlu0 %v2150_v23, %s2429_s0  ;;  %v1092_v18 = vsel %vm426_vm15, %v2597_v8, %v2158_v63 }
0x1351   :  { %v2147_v15 = vpop.permute.xlu0 %2146 }
0x1352   :  { %v2149_v55 = vunpack.i.h.bf16 %v2147_v15  ;;  %v2148_v58 = vunpack.i.l.bf16 %v2147_v15 }
0x1354   :  { %v1080_v2 = vsel %vm426_vm15, %v2557_v62, %v2149_v55  ;;  %v1074_v4 = vsel %vm426_vm15, %v2537_v32, %v2148_v58  ;;  %v1116_v62 = vsel %vm426_vm15, %v1068_v50, %v2159_v61 }
0x1355   :  { %v2152_v5 = vpop.permute.xlu0 %2151  ;;  %v1118_v12 = vsel %vm1117_vm0, %v1074_v4, %v1080_v2 }
0x1356   :  { %v2154_v9 = vunpack.i.h.bf16 %v2152_v5  ;;  %v2153_v6 = vunpack.i.l.bf16 %v2152_v5 }
0x1358   :  { %v1110_v7 = vsel %vm426_vm15, %v2650_v46, %v2154_v9  ;;  %v1086_v45 = vsel %vm426_vm15, %v2577_v39, %v2153_v6  ;;  %v1335_v39 = vpop.f32.mrf.mxu1 }
0x1359   :  { %v1124_v22 = vsel %vm1119_vm1, %v1123_v11, %v1110_v7  ;;  %v1120_v32 = vsel %vm1119_vm1, %v1118_v12, %v1086_v45 }
0x135a   :  { %v1122_v24 = vsel %vm1121_vm2, %v1120_v32, %v1092_v18  ;;  %v1125_v29 = vsel %vm1121_vm2, %v1124_v22, %v1116_v62  ;;  %v1337_v8 = vpop.f32.mrf.mxu1 }
0x135b   :  { %v1126_v30 = vpack.c.bf16 %v1125_v29, %v1122_v24 }
0x135c   :  { %v1339_v46 = vpop.f32.mrf.mxu1 }
0x135d   :  { %1251 = vmatmul.mubr.bf16.vlgmr.msra.gmra.mxu0 %v1126_v30 }
0x135e   :  { %1465 = vmatpush1.bf16.msra.mxu0 %v2666_v13  ;;  %1488 = vmatprep.mubr.bf16.mxu0 %v2426_v1  ;;  %v1340_v31 = vpop.f32.mrf.mxu1 }
0x135f   :  { %1466 = vmatprep.subr.bf16.mxu0 %v2669_v20 }
0x1362   :  { %1467 = vmatpush1.bf16.msra.mxu0 %v2673_v26 }
0x1363   :  { %1468 = vmatprep.subr.bf16.mxu0 %v2676_v27 }
0x1366   :  { %1469 = vmatpush1.bf16.msra.mxu0 %v2683_v38 }
0x1367   :  { %1470 = vmatprep.subr.bf16.mxu0 %v2686_v42 }
0x136a   :  { %1471 = vmatpush1.bf16.msra.mxu0 %v2688_v44 }
0x136b   :  { %1630 = vmatprep.subr.bf16.mxu0 %v2662_v10 }
0x141d   :  { %v1252_v60 = vpop.f32.mrf.mxu0 }
0x141e   :  { %v2746_v56 = vadd.f32 %v1252_v60, %v1131_v36 }
0x141f   :  { %v1254_v35 = vpop.f32.mrf.mxu0 }
0x1420   :  { %v2739_v37 = vadd.f32 %v1254_v35, %v2735_v34  ;;  %v1342_v57 = vadd.f32 %v1335_v39, %v2746_v56 }
0x1421   :  { %v1256_v40 = vpop.f32.mrf.mxu0 }
0x1422   :  { %v1343_v41 = vadd.f32 %v1337_v8, %v2739_v37  ;;  %v2742_v43 = vadd.f32 %v1256_v40, %v1131_v36  ;;  %v1344_v49 = vmul.f32 0.5, %v1342_v57 }
0x1423   :  { %v2777_v35 = vpop.f32.mrf.mxu0 }
0x1424   :  { %v1345_v47 = vmul.f32 %v1343_v41, %v2525_v3 }
0x1426   :  { %2305 = vtanh.f32 %v1345_v47 }
0x1427   :  { %2307 = vtanh.f32 %v1344_v49 }
0x1433   :  { %v2306_v48 = vpop.eup %2305 }
0x1434   :  { %1354 = vrot.lane.b32.xlu0 %v2306_v48, %s2429_s0  ;;  %v2308_v50 = vpop.eup %2307  ;;  %v1349_v28 = vmul.f32 0.5, %v2306_v48 }
0x1435   :  { %v1348_v16 = vmul.f32 0.5, %v2308_v50 }
0x1436   :  { %v1351_v53 = vadd.f32 0.5, %v1349_v28 }
0x1437   :  { %v1350_v51 = vadd.f32 0.5, %v1348_v16 }
0x1439   :  { %v1352_v19 = vmul.f32 0.0, %v1350_v51 }
0x14a6   :  { %v1355_v52 = vpop.permute.xlu0 %1354 }
0x14a7   :  { %v1357_v17 = vmul.f32 %v1355_v52, %v1350_v51 }
0x14a9   :  { %1359 = vrot.lane.b32.xlu1 %v1357_v17, %s2429_s0 }
0x151b   :  { %v1360_v21 = vpop.permute.xlu1 %1359 }
0x151c   :  { %v1362_v23 = vadd.f32 %v1360_v21, %v1352_v19 }
0x151e   :  { %2309 = vtanh.f32 %v1362_v23  ;;  %v1431_v22 = vrot.slane %v1362_v23, 6 }
0x152b   :  { %v2310_v25 = vpop.eup %2309 }
0x152c   :  { %1365 = vrot.lane.b32.xlu0 %v2310_v25, %s2429_s0 }
0x159e   :  { %v1366_v15 = vpop.permute.xlu0 %1365 }
0x159f   :  { %v1368_v54 = vmul.f32 %v1366_v15, %v1351_v53 }
0x15a1   :  { %v1369_v55 = vpack.c.bf16 %v1368_v54, %v1368_v54 }
0x15a3   :  { %2117 = vmatmul.mubr.msk.bf16.vlgmr.msra.gmra.mxu1 %vm426_vm15, %v1369_v55 }
0x15a4   :  { %1548 = vmatpush1.bf16.msra.mxu1 %v2666_v13  ;;  %1571 = vmatprep.mubr.bf16.mxu1 %v2426_v1 }
0x15a5   :  { %1549 = vmatprep.subr.bf16.mxu1 %v2669_v20 }
0x15a8   :  { %1550 = vmatpush1.bf16.msra.mxu1 %v2673_v26 }
0x15a9   :  { %1551 = vmatprep.subr.bf16.mxu1 %v2676_v27 }
0x15ac   :  { %1552 = vmatpush1.bf16.msra.mxu1 %v2683_v38 }
0x15ad   :  { %1553 = vmatprep.subr.bf16.mxu1 %v2686_v42 }
0x15b0   :  { %1554 = vmatpush1.bf16.msra.mxu1 %v2688_v44 }
0x15b1   :  { %1705 = vmatprep.subr.bf16.mxu1 %v2662_v10 }
0x1663   :  { %v1407_v58 = vpop.f32.mrf.mxu1 }
0x1664   :  { %v1416_v9 = vrot.slane %v1407_v58, 6 }
0x1665   :  { %v1409_v14 = vpop.f32.mrf.mxu1 }
0x1666   :  { %v1417_v0 = vrot.slane %v1409_v14, 6  ;;  %v1420_v6 = vadd.f32 %v1416_v9, %v2746_v56 }
0x1667   :  { %v1411_v61 = vpop.f32.mrf.mxu1 }
0x1668   :  { %v1421_v63 = vadd.f32 %v1417_v0, %v2739_v37  ;;  %v1422_v11 = vmul.f32 0.5, %v1420_v6 }
0x1669   :  { %v1412_v2 = vpop.f32.mrf.mxu1 }
0x166a   :  { %v1423_v4 = vmul.f32 %v1421_v63, %v2525_v3 }
0x166c   :  { %2311 = vtanh.f32 %v1423_v4 }
0x166d   :  { %2313 = vtanh.f32 %v1422_v11 }
0x1679   :  { %v2312_v5 = vpop.eup %2311 }
0x167a   :  { %1435 = vrot.lane.b32.xlu1 %v2312_v5, %s2429_s0  ;;  %v2314_v12 = vpop.eup %2313  ;;  %v1427_v39 = vmul.f32 0.5, %v2312_v5 }
0x167b   :  { %v1426_v7 = vmul.f32 0.5, %v2314_v12 }
0x167c   :  { %v1429_v8 = vadd.f32 0.5, %v1427_v39 }
0x167d   :  { %v1428_v45 = vadd.f32 0.5, %v1426_v7 }
0x167f   :  { %v1433_v32 = vmul.f32 %v1431_v22, %v1428_v45 }
0x16ec   :  { %v1436_v18 = vpop.permute.xlu1 %1435 }
0x16ed   :  { %v1438_v62 = vmul.f32 %v1436_v18, %v1428_v45 }
0x16ef   :  { %1440 = vrot.lane.b32.xlu0 %v1438_v62, %s2429_s0 }
0x1761   :  { %v1441_v24 = vpop.permute.xlu0 %1440 }
0x1762   :  { %v1443_v29 = vadd.f32 %v1441_v24, %v1433_v32 }
0x1764   :  { %2315 = vtanh.f32 %v1443_v29  ;;  %v1514_v28 = vrot.slane %v1443_v29, 6 }
0x1771   :  { %v2316_v30 = vpop.eup %2315 }
0x1772   :  { %1446 = vrot.lane.b32.xlu1 %v2316_v30, %s2429_s0 }
0x17e4   :  { %v1447_v46 = vpop.permute.xlu1 %1446 }
0x17e5   :  { %v1449_v31 = vmul.f32 %v1447_v46, %v1429_v8 }
0x17e7   :  { %v1450_v33 = vpack.c.bf16 %v1449_v31, %v1449_v31 }
0x17e9   :  { %v1452_v60 = vrot.slane %v1450_v33, 1 }
0x17eb   :  { %2118 = vmatmul.mubr.msk.bf16.vlgmr.msra.gmra.mxu0 %vm426_vm15, %v1452_v60 }
0x17ec   :  { %1631 = vmatpush1.bf16.msra.mxu0 %v2666_v13  ;;  %1654 = vmatprep.mubr.bf16.mxu0 %v2426_v1 }
0x17ed   :  { %1632 = vmatprep.subr.bf16.mxu0 %v2669_v20 }
0x17f0   :  { %1633 = vmatpush1.bf16.msra.mxu0 %v2673_v26 }
0x17f1   :  { %1634 = vmatprep.subr.bf16.mxu0 %v2676_v27 }
0x17f4   :  { %1635 = vmatpush1.bf16.msra.mxu0 %v2683_v38 }
0x17f5   :  { %1636 = vmatprep.subr.bf16.mxu0 %v2686_v42 }
0x17f8   :  { %1637 = vmatpush1.bf16.msra.mxu0 %v2688_v44 }
0x17f9   :  { %1788 = vmatprep.subr.bf16.mxu0 %v2662_v10 }
0x18ab   :  { %v1490_v36 = vpop.f32.mrf.mxu0 }
0x18ac   :  { %v1499_v16 = vrot.slane %v1490_v36, 4 }
0x18ad   :  { %v1492_v40 = vpop.f32.mrf.mxu0 }
0x18ae   :  { %v1500_v41 = vrot.slane %v1492_v40, 4  ;;  %v1503_v51 = vadd.f32 %v1499_v16, %v2746_v56 }
0x18af   :  { %v1494_v47 = vpop.f32.mrf.mxu0 }
0x18b0   :  { %v1504_v48 = vadd.f32 %v1500_v41, %v2739_v37  ;;  %v1505_v52 = vmul.f32 0.5, %v1503_v51 }
0x18b1   :  { %v1495_v57 = vpop.f32.mrf.mxu0 }
0x18b2   :  { %v1506_v49 = vmul.f32 %v1504_v48, %v2525_v3  ;;  %v2812_v48 = vadd.f32 %v2777_v35, %v2735_v34 }
0x18b4   :  { %2317 = vtanh.f32 %v1506_v49 }
0x18b5   :  { %2319 = vtanh.f32 %v1505_v52 }
0x18c1   :  { %v2318_v50 = vpop.eup %2317 }
0x18c2   :  { %1518 = vrot.lane.b32.xlu0 %v2318_v50, %s2429_s0  ;;  %v2320_v17 = vpop.eup %2319  ;;  %v1510_v58 = vmul.f32 0.5, %v2318_v50 }
0x18c3   :  { %v1509_v19 = vmul.f32 0.5, %v2320_v17 }
0x18c4   :  { %v1512_v14 = vadd.f32 0.5, %v1510_v58 }
0x18c5   :  { %v1511_v21 = vadd.f32 0.5, %v1509_v19 }
0x18c7   :  { %v1516_v53 = vmul.f32 %v1514_v28, %v1511_v21 }
0x1934   :  { %v1519_v23 = vpop.permute.xlu0 %1518 }
0x1935   :  { %v1521_v25 = vmul.f32 %v1519_v23, %v1511_v21 }
0x1937   :  { %1523 = vrot.lane.b32.xlu1 %v1521_v25, %s2429_s0 }
0x19a9   :  { %v1524_v15 = vpop.permute.xlu1 %1523 }
0x19aa   :  { %v1526_v54 = vadd.f32 %v1524_v15, %v1516_v53 }
0x19ac   :  { %2321 = vtanh.f32 %v1526_v54 }
0x19b9   :  { %v2322_v55 = vpop.eup %2321 }
0x19ba   :  { %1529 = vrot.lane.b32.xlu0 %v2322_v55, %s2429_s0 }
0x1a2c   :  { %v1530_v0 = vpop.permute.xlu0 %1529 }
0x1a2d   :  { %v1532_v61 = vmul.f32 %v1530_v0, %v1512_v14 }
0x1a2f   :  { %v1533_v63 = vpack.c.bf16 %v1532_v61, %v1532_v61 }
0x1a31   :  { %v1535_v2 = vrot.slane %v1533_v63, 2 }
0x1a33   :  { %2119 = vmatmul.mubr.msk.bf16.vlgmr.msra.gmra.mxu1 %vm426_vm15, %v1535_v2 }
0x1a34   :  { %1706 = vmatpush1.bf16.msra.mxu1 %v2666_v13  ;;  %1729 = vmatprep.mubr.bf16.mxu1 %v2426_v1 }
0x1a35   :  { %1707 = vmatprep.subr.bf16.mxu1 %v2669_v20 }
0x1a38   :  { %1708 = vmatpush1.bf16.msra.mxu1 %v2673_v26 }
0x1a39   :  { %1709 = vmatprep.subr.bf16.mxu1 %v2676_v27 }
0x1a3c   :  { %1710 = vmatpush1.bf16.msra.mxu1 %v2683_v38 }
0x1a3d   :  { %1711 = vmatprep.subr.bf16.mxu1 %v2686_v42 }
0x1a40   :  { %1712 = vmatpush1.bf16.msra.mxu1 %v2688_v44 }
0x1a41   :  { %1871 = vmatprep.subr.bf16.mxu1 %v2662_v10 }
0x1af3   :  { %v1573_v4 = vpop.f32.mrf.mxu1 }
0x1af4   :  { %v1582_v18 = vrot.slane %v1573_v4, 2 }
0x1af5   :  { %v1575_v5 = vpop.f32.mrf.mxu1 }
0x1af6   :  { %v1583_v9 = vrot.slane %v1575_v5, 2  ;;  %v1586_v62 = vadd.f32 %v1582_v18, %v2746_v56 }
0x1af7   :  { %v1577_v6 = vpop.f32.mrf.mxu1 }
0x1af8   :  { %v1587_v11 = vadd.f32 %v1583_v9, %v2739_v37  ;;  %v1588_v22 = vmul.f32 0.5, %v1586_v62  ;;  %v1597_v37 = vrot.slane %v1526_v54, 6 }
0x1af9   :  { %v1578_v12 = vpop.f32.mrf.mxu1 }
0x1afa   :  { %v1589_v7 = vmul.f32 %v1587_v11, %v2525_v3 }
0x1afc   :  { %2323 = vtanh.f32 %v1589_v7 }
0x1afd   :  { %2325 = vtanh.f32 %v1588_v22 }
0x1b09   :  { %v2324_v45 = vpop.eup %2323 }
0x1b0a   :  { %1601 = vrot.lane.b32.xlu1 %v2324_v45, %s2429_s0  ;;  %v2326_v32 = vpop.eup %2325  ;;  %v1593_v33 = vmul.f32 0.5, %v2324_v45 }
0x1b0b   :  { %v1592_v10 = vmul.f32 0.5, %v2326_v32 }
0x1b0c   :  { %v1595_v60 = vadd.f32 0.5, %v1593_v33 }
0x1b0d   :  { %v1594_v24 = vadd.f32 0.5, %v1592_v10 }
0x1b0f   :  { %v1599_v39 = vmul.f32 %v1597_v37, %v1594_v24 }
0x1b7c   :  { %v1602_v29 = vpop.permute.xlu1 %1601 }
0x1b7d   :  { %v1604_v30 = vmul.f32 %v1602_v29, %v1594_v24 }
0x1b7f   :  { %1606 = vrot.lane.b32.xlu0 %v1604_v30, %s2429_s0 }
0x1bf1   :  { %v1607_v8 = vpop.permute.xlu0 %1606 }
0x1bf2   :  { %v1609_v46 = vadd.f32 %v1607_v8, %v1599_v39 }
0x1bf4   :  { %2327 = vtanh.f32 %v1609_v46  ;;  %v1674_v28 = vrot.slane %v1609_v46, 6 }
0x1c01   :  { %v2328_v31 = vpop.eup %2327 }
0x1c02   :  { %1612 = vrot.lane.b32.xlu1 %v2328_v31, %s2429_s0 }
0x1c74   :  { %v1613_v56 = vpop.permute.xlu1 %1612 }
0x1c75   :  { %v1615_v36 = vmul.f32 %v1613_v56, %v1595_v60 }
0x1c77   :  { %v1616_v40 = vpack.c.bf16 %v1615_v36, %v1615_v36 }
0x1c79   :  { %v1618_v41 = vrot.slane %v1616_v40, 3 }
0x1c7b   :  { %2120 = vmatmul.mubr.msk.bf16.vlgmr.msra.gmra.mxu0 %vm426_vm15, %v1618_v41 }
0x1c7c   :  { %1789 = vmatpush1.bf16.msra.mxu0 %v2666_v13  ;;  %1812 = vmatprep.mubr.bf16.mxu0 %v2426_v1 }
0x1c7d   :  { %1790 = vmatprep.subr.bf16.mxu0 %v2669_v20 }
0x1c80   :  { %1791 = vmatpush1.bf16.msra.mxu0 %v2673_v26 }
0x1c81   :  { %1792 = vmatprep.subr.bf16.mxu0 %v2676_v27 }
0x1c84   :  { %1793 = vmatpush1.bf16.msra.mxu0 %v2683_v38 }
0x1c85   :  { %1794 = vmatprep.subr.bf16.mxu0 %v2686_v42 }
0x1c88   :  { %1795 = vmatpush1.bf16.msra.mxu0 %v2688_v44 }
0x1d3b   :  { %v1656_v47 = vpop.f32.mrf.mxu0 }
0x1d3c   :  { %v1663_v17 = vadd.f32 %v1656_v47, %v2742_v43 }
0x1d3d   :  { %v1658_v57 = vpop.f32.mrf.mxu0 }
0x1d3e   :  { %v1664_v49 = vadd.f32 %v1658_v57, %v2812_v48  ;;  %v1665_v19 = vmul.f32 0.5, %v1663_v17 }
0x1d3f   :  { %v1660_v50 = vpop.f32.mrf.mxu0 }
0x1d40   :  { %v1666_v16 = vmul.f32 %v1664_v49, %v2525_v3 }
0x1d41   :  { %v1661_v51 = vpop.f32.mrf.mxu0 }
0x1d42   :  { %2329 = vtanh.f32 %v1666_v16 }
0x1d43   :  { %2331 = vtanh.f32 %v1665_v19 }
0x1d4f   :  { %v2330_v52 = vpop.eup %2329 }
0x1d50   :  { %1678 = vrot.lane.b32.xlu0 %v2330_v52, %s2429_s0  ;;  %v2332_v21 = vpop.eup %2331  ;;  %v1670_v58 = vmul.f32 0.5, %v2330_v52 }
0x1d51   :  { %v1669_v23 = vmul.f32 0.5, %v2332_v21 }
0x1d52   :  { %v1672_v14 = vadd.f32 0.5, %v1670_v58 }
0x1d53   :  { %v1671_v25 = vadd.f32 0.5, %v1669_v23 }
0x1d55   :  { %v1676_v53 = vmul.f32 %v1674_v28, %v1671_v25 }
0x1dc2   :  { %v1679_v34 = vpop.permute.xlu0 %1678 }
0x1dc3   :  { %v1681_v35 = vmul.f32 %v1679_v34, %v1671_v25 }
0x1dc5   :  { %1683 = vrot.lane.b32.xlu1 %v1681_v35, %s2429_s0 }
0x1e37   :  { %v1684_v15 = vpop.permute.xlu1 %1683 }
0x1e38   :  { %v1686_v54 = vadd.f32 %v1684_v15, %v1676_v53 }
0x1e3a   :  { %2333 = vtanh.f32 %v1686_v54  ;;  %v1755_v45 = vrot.slane %v1686_v54, 6 }
0x1e47   :  { %v2334_v55 = vpop.eup %2333 }
0x1e48   :  { %1689 = vrot.lane.b32.xlu0 %v2334_v55, %s2429_s0 }
0x1eba   :  { %v1690_v0 = vpop.permute.xlu0 %1689 }
0x1ebb   :  { %v1692_v61 = vmul.f32 %v1690_v0, %v1672_v14 }
0x1ebd   :  { %v1693_v63 = vpack.c.bf16 %v1692_v61, %v1692_v61 }
0x1ebf   :  { %2121 = vmatmul.mubr.msk.bf16.vlgmr.msra.gmra.mxu1 %vm426_vm15, %v1693_v63 }
0x1ec0   :  { %1872 = vmatpush1.bf16.msra.mxu1 %v2666_v13  ;;  %1895 = vmatprep.mubr.bf16.mxu1 %v2426_v1 }
0x1ec1   :  { %1873 = vmatprep.subr.bf16.mxu1 %v2669_v20 }
0x1ec4   :  { %1874 = vmatpush1.bf16.msra.mxu1 %v2673_v26 }
0x1ec5   :  { %1875 = vmatprep.subr.bf16.mxu1 %v2676_v27 }
0x1ec8   :  { %1876 = vmatpush1.bf16.msra.mxu1 %v2683_v38 }
0x1ec9   :  { %1877 = vmatprep.subr.bf16.mxu1 %v2686_v42 }
0x1ecc   :  { %1878 = vmatpush1.bf16.msra.mxu1 %v2688_v44 }
0x1f7f   :  { %v1731_v2 = vpop.f32.mrf.mxu1 }
0x1f80   :  { %v1740_v26 = vrot.slane %v1731_v2, 6 }
0x1f81   :  { %v1733_v4 = vpop.f32.mrf.mxu1 }
0x1f82   :  { %v1741_v5 = vrot.slane %v1733_v4, 6  ;;  %v1744_v27 = vadd.f32 %v1740_v26, %v2742_v43 }
0x1f83   :  { %v1735_v9 = vpop.f32.mrf.mxu1 }
0x1f84   :  { %v1745_v13 = vadd.f32 %v1741_v5, %v2812_v48  ;;  %v1746_v38 = vmul.f32 0.5, %v1744_v27 }
0x1f85   :  { %v1736_v6 = vpop.f32.mrf.mxu1 }
0x1f86   :  { %v1747_v1 = vmul.f32 %v1745_v13, %v2525_v3 }
0x1f88   :  { %2335 = vtanh.f32 %v1747_v1 }
0x1f89   :  { %2337 = vtanh.f32 %v1746_v38  ;;  %v127_v38 = vld [vmem:[#allocation5 + $0x80] sm:$0xff] }
0x1f95   :  { %v2336_v20 = vpop.eup %2335 }
0x1f96   :  { %1759 = vrot.lane.b32.xlu1 %v2336_v20, %s2429_s0  ;;  %v2338_v42 = vpop.eup %2337  ;;  %v1751_v10 = vmul.f32 0.5, %v2336_v20 }
0x1f97   :  { %v1750_v44 = vmul.f32 0.5, %v2338_v42  ;;  %v126_v42 = vld [vmem:[#allocation5 + $0x78] sm:$0xff] }
0x1f98   :  { %v1753_v24 = vadd.f32 0.5, %v1751_v10 }
0x1f99   :  { %v1752_v11 = vadd.f32 0.5, %v1750_v44  ;;  %v124_v44 = vld [vmem:[#allocation5 + $0x68] sm:$0xff] }
0x1f9b   :  { %v1757_v18 = vmul.f32 %v1755_v45, %v1752_v11  ;;  %v119_v45 = vld [vmem:[#allocation5 + $0x40] sm:$0xff] }
0x2008   :  { %v1760_v12 = vpop.permute.xlu1 %1759 }
0x2009   :  { %v1762_v7 = vmul.f32 %v1760_v12, %v1752_v11  ;;  %v123_v11 = vld [vmem:[#allocation5 + $0x60] sm:$0xff]  ;;  %v121_v12 = vld [vmem:[#allocation5 + $0x50] sm:$0xff] }
0x200b   :  { %1764 = vrot.lane.b32.xlu0 %v1762_v7, %s2429_s0  ;;  %v120_v7 = vld [vmem:[#allocation5 + $0x48] sm:$0xff] }
0x207d   :  { %v1765_v62 = vpop.permute.xlu0 %1764 }
0x207e   :  { %v1767_v22 = vadd.f32 %v1765_v62, %v1757_v18  ;;  %v118_v18 = vld [vmem:[#allocation5 + $0x38] sm:$0xff]  ;;  %v117_v62 = vld [vmem:[#allocation5 + $0x30] sm:$0xff] }
0x2080   :  { %2339 = vtanh.f32 %v1767_v22  ;;  %v1838_v17 = vrot.slane %v1767_v22, 6 }
0x208d   :  { %v2340_v32 = vpop.eup %2339 }
0x208e   :  { %1770 = vrot.lane.b32.xlu1 %v2340_v32, %s2429_s0 }
0x2100   :  { %v1771_v29 = vpop.permute.xlu1 %1770 }
0x2101   :  { %v1773_v30 = vmul.f32 %v1771_v29, %v1753_v24  ;;  %v116_v29 = vld [vmem:[#allocation5 + $0x28] sm:$0xff] }
0x2103   :  { %v1774_v37 = vpack.c.bf16 %v1773_v30, %v1773_v30  ;;  %v115_v30 = vld [vmem:[#allocation5 + $0x20] sm:$0xff] }
0x2105   :  { %v1776_v39 = vrot.slane %v1774_v37, 1  ;;  %v114_v37 = vld [vmem:[#allocation5 + $0x18] sm:$0xff] }
0x2107   :  { %2122 = vmatmul.mubr.msk.bf16.vlgmr.msra.gmra.mxu0 %vm426_vm15, %v1776_v39  ;;  %v113_v39 = vld [vmem:[#allocation5 + $0x10] sm:$0xff] }
0x21c7   :  { %v1814_v8 = vpop.f32.mrf.mxu0 }
0x21c8   :  { %v1823_v41 = vrot.slane %v1814_v8, 4  ;;  %v2430_v8 = vmov 0.0  }
0x21c9   :  { %v1816_v46 = vpop.f32.mrf.mxu0  ;;  %2014 = vmatprep.mubr.f32.mxu0 %v2430_v8 }
0x21ca   :  { %v1824_v31 = vrot.slane %v1816_v46, 4  ;;  %v1827_v47 = vadd.f32 %v1823_v41, %v2742_v43 }
0x21cb   :  { %v1818_v33 = vpop.f32.mrf.mxu0 }
0x21cc   :  { %v1828_v60 = vadd.f32 %v1824_v31, %v2812_v48  ;;  %v1829_v57 = vmul.f32 0.5, %v1827_v47 }
0x21cd   :  { %v1819_v56 = vpop.f32.mrf.mxu0 }
0x21ce   :  { %v1830_v36 = vmul.f32 %v1828_v60, %v2525_v3 }
0x21d0   :  { %2341 = vtanh.f32 %v1830_v36 }
0x21d1   :  { %2343 = vtanh.f32 %v1829_v57 }
0x21dd   :  { %v2342_v40 = vpop.eup %2341 }
0x21de   :  { %1842 = vrot.lane.b32.xlu0 %v2342_v40, %s2429_s0  ;;  %v2344_v49 = vpop.eup %2343  ;;  %v1834_v34 = vmul.f32 0.5, %v2342_v40  ;;  %v112_v40 = vld [vmem:[#allocation5 + $0x2] ss:$8 sm:$0x3] }
0x21df   :  { %v1833_v50 = vmul.f32 0.5, %v2344_v49  ;;  %v1944_v41 = vrot.slane %v112_v40, %v2515_v59 }
0x21e0   :  { %v1836_v35 = vadd.f32 0.5, %v1834_v34 }
0x21e1   :  { %v1835_v16 = vadd.f32 0.5, %v1833_v50 }
0x21e3   :  { %v1840_v19 = vmul.f32 %v1838_v17, %v1835_v16 }
0x2250   :  { %v1843_v51 = vpop.permute.xlu0 %1842 }
0x2251   :  { %v1845_v52 = vmul.f32 %v1843_v51, %v1835_v16 }
0x2253   :  { %1847 = vrot.lane.b32.xlu1 %v1845_v52, %s2429_s0 }
0x22c5   :  { %v1848_v21 = vpop.permute.xlu1 %1847 }
0x22c6   :  { %v1850_v23 = vadd.f32 %v1848_v21, %v1840_v19 }
0x22c8   :  { %2345 = vtanh.f32 %v1850_v23  ;;  %v1921_v22 = vrot.slane %v1850_v23, 6 }
0x22d5   :  { %v2346_v25 = vpop.eup %2345 }
0x22d6   :  { %1853 = vrot.lane.b32.xlu0 %v2346_v25, %s2429_s0 }
0x2348   :  { %v1854_v28 = vpop.permute.xlu0 %1853 }
0x2349   :  { %v1856_v53 = vmul.f32 %v1854_v28, %v1836_v35 }
0x234b   :  { %v1857_v15 = vpack.c.bf16 %v1856_v53, %v1856_v53 }
0x234d   :  { %v1859_v54 = vrot.slane %v1857_v15, 2 }
0x234f   :  { %2123 = vmatmul.mubr.msk.bf16.vlgmr.msra.gmra.mxu1 %vm426_vm15, %v1859_v54 }
0x240f   :  { %v1897_v55 = vpop.f32.mrf.mxu1 }
0x2410   :  { %v1906_v5 = vrot.slane %v1897_v55, 2 }
0x2411   :  { %v1899_v58 = vpop.f32.mrf.mxu1 }
0x2412   :  { %v1907_v14 = vrot.slane %v1899_v58, 2  ;;  %v1910_v9 = vadd.f32 %v1906_v5, %v2742_v43  ;;  %v122_v43 = vld [vmem:[#allocation5 + $0x58] sm:$0xff] }
0x2413   :  { %v1901_v0 = vpop.f32.mrf.mxu1 }
0x2414   :  { %v1911_v61 = vadd.f32 %v1907_v14, %v2812_v48  ;;  %v1912_v13 = vmul.f32 0.5, %v1910_v9  ;;  %v128_v48 = vld [vmem:[#allocation5 + $0x88] sm:$0xff] }
0x2415   :  { %v1902_v63 = vpop.f32.mrf.mxu1  ;;  %1966 = vmatprep.subr.mxu0 %v128_v48 }
0x2416   :  { %v1913_v2 = vmul.f32 %v1911_v61, %v2525_v3  ;;  %v125_v3 = vld [vmem:[#allocation5 + $0x70] sm:$0xff]  ;;  %1967 = vmatpush1.msra.mxu0 %v127_v38 }
0x2417   :  { %1968 = vmatprep.subr.mxu0 %v126_v42 }
0x2418   :  { %2347 = vtanh.f32 %v1913_v2  ;;  %1969 = vmatpush1.msra.mxu0 %v125_v3 }
0x2419   :  { %2349 = vtanh.f32 %v1912_v13  ;;  %1970 = vmatprep.subr.mxu0 %v124_v44 }
0x241a   :  { %1971 = vmatpush1.msra.mxu0 %v123_v11 }
0x241b   :  { %1972 = vmatprep.subr.mxu0 %v122_v43 }
0x241c   :  { %1973 = vmatpush1.msra.mxu0 %v121_v12 }
0x241d   :  { %1974 = vmatprep.subr.mxu0 %v120_v7 }
0x241e   :  { %1975 = vmatpush1.msra.mxu0 %v119_v45 }
0x241f   :  { %1976 = vmatprep.subr.mxu0 %v118_v18 }
0x2420   :  { %1977 = vmatpush1.msra.mxu0 %v117_v62 }
0x2421   :  { %1978 = vmatprep.subr.mxu0 %v116_v29 }
0x2422   :  { %1979 = vmatpush1.msra.mxu0 %v115_v30 }
0x2423   :  { %1980 = vmatprep.subr.mxu0 %v114_v37 }
0x2424   :  { %1981 = vmatpush1.msra.mxu0 %v113_v39 }
0x2425   :  { %v2348_v4 = vpop.eup %2347 }
0x2426   :  { %1925 = vrot.lane.b32.xlu1 %v2348_v4, %s2429_s0  ;;  %v2350_v6 = vpop.eup %2349  ;;  %v1917_v31 = vmul.f32 0.5, %v2348_v4 }
0x2427   :  { %v1916_v1 = vmul.f32 0.5, %v2350_v6 }
0x2428   :  { %v1919_v33 = vadd.f32 0.5, %v1917_v31 }
0x2429   :  { %v1918_v20 = vadd.f32 0.5, %v1916_v1 }
0x242b   :  { %v1923_v32 = vmul.f32 %v1921_v22, %v1918_v20 }
0x2498   :  { %v1926_v26 = vpop.permute.xlu1 %1925 }
0x2499   :  { %v1928_v27 = vmul.f32 %v1926_v26, %v1918_v20 }
0x249b   :  { %1930 = vrot.lane.b32.xlu0 %v1928_v27, %s2429_s0 }
0x250d   :  { %v1931_v10 = vpop.permute.xlu0 %1930 }
0x250e   :  { %v1933_v24 = vadd.f32 %v1931_v10, %v1923_v32 }
0x2510   :  { %2351 = vtanh.f32 %v1933_v24 }
0x251d   :  { %v2352_v46 = vpop.eup %2351 }
0x251e   :  { %1936 = vrot.lane.b32.xlu1 %v2352_v46, %s2429_s0 }
0x2590   :  { %v1937_v60 = vpop.permute.xlu1 %1936 }
0x2591   :  { %v1939_v56 = vmul.f32 %v1937_v60, %v1919_v33 }
0x2593   :  { %v1947_v36 = vrot.slane %v1939_v56, 6 }
0x2595   :  { %2124 = vmatmul.mubr.msk.f32.vlgmr.msra.gmra.mxu0 %vm426_vm15, %v1947_v36 }
0x2655   :  { %v2016_v47 = vpop.f32.mrf.mxu0 }
0x2656   :  { %v2017_v57 = vadd.f32 %v2016_v47, %v1944_v41 }
0x2657   :  { %v2018_v49 = vpop.f32.mrf.mxu0 }
0x2658   :  { %2021 = vst.msk [vmem:[#allocation7] sm:$0x3] %vm2020_vm3, %v2017_v57 }
0x2659   :  { %2404 = shalt.err (!%p2401_p0)
}
0x265a   :  { %2031 = dma.vmem_to_hbm [thread:$0]  %s2029_s29, 32, %s2857_s3, [#allocation4]  }
0x265b   :  { %2417 = dma.done.wait [#allocation4], 32  }
0x265c   :  { %2418 = vsyncadd [#allocation4], 4294967264 }
0x265d   :  { %2035 = vsyncpa [#allocation3], 1 }
0x265e   :  { %2036 = vsyncpa [#allocation6], 1 }
0x265f   :  { %2037 = vsyncpa [#allocation4], 1 }

</bundles_post_ra>
